<compile_context>
chip_gen: v7x
topology: tpu7x:2x2x1
jax: 0.10.0
libtpu: 0.0.40
codegen_flags: <defaults>
</compile_context>

<pallas_src>
import functools
import numpy as np
import jax
import jax.numpy as jnp
from jax.experimental import pallas as pl
from jax.experimental.pallas import tpu as pltpu

BN_EPS = 1e-5


def get_size(input_shape, k_size, max_pool_k_size, layers):
    for i in range(layers):
        if i == 0:
            size = int((input_shape - k_size + 1) / max_pool_k_size)
        elif i == layers - 1:
            size = int(size - k_size + 1)
        else:
            size = int((size - k_size + 1) / max_pool_k_size)
    return size


def _round_up(x, m):
    return ((x + m - 1) // m) * m


def _cnn_kernel(*refs, layers, ksize):
    # ref order: x, [wt_i, bt_i]*layers, fc1_w2d, fc1_bT, fc2_wT, fc2_bT, out
    idx = 0
    x_ref = refs[idx]; idx += 1
    conv_refs = []
    for _ in range(layers):
        conv_refs.append((refs[idx], refs[idx + 1])); idx += 2
    fc1_w_ref, fc1_b_ref, fc2_w_ref, fc2_b_ref = refs[idx:idx + 4]; idx += 4
    out_ref = refs[idx]

    # (L0, 1, B_tile): L leading, single input channel on sublanes, batch on lanes.
    a = x_ref[...].astype(jnp.float32)

    for i, (wt_ref, bt_ref) in enumerate(conv_refs):
        l_in, c_in, bt = a.shape
        c_out = wt_ref.shape[1]
        l_out = l_in - ksize + 1

        # Conv1d (BN already folded into wt/bt for non-last layers): channels are tiny
        # (<=8), so K*Cin VPU broadcast-FMAs over (l_out, c_out, bt) beat a padded MXU op.
        y = jnp.zeros((l_out, c_out, bt), jnp.float32)
        for k in range(ksize):
            xs = a[k:k + l_out]                      # (l_out, c_in, bt) leading-dim slice
            wk = wt_ref[k]                           # (c_out, c_in)
            for ci in range(c_in):
                # (l_out, 1, bt) * (c_out, 1) -> (l_out, c_out, bt)
                y = y + xs[:, ci:ci + 1, :] * wk[:, ci:ci + 1]
        y = y + bt_ref[...]                          # bias (c_out, 1), broadcast over l,b

        if i < layers - 1:
            y = jnp.maximum(y, 0.0)                  # ReLU (BN folded)
            # Dropout(p=0.5): inference-mode identity.
            # MaxPool1d(kernel=3, stride=3), floor mode: vectorized over the leading axis.
            p_out = (l_out - 3) // 3 + 1
            y4 = y[:3 * p_out].reshape(p_out, 3, c_out, bt)
            y = jnp.maximum(jnp.maximum(y4[:, 0], y4[:, 1]), y4[:, 2])   # (p_out, c_out, bt)
        a = y

    # decoding_layer1: per-sample flatten == sublane concat; single MXU matmul,
    # M = 128 hidden rows, N = B_tile lanes.
    l_last = a.shape[0]
    flat = jnp.concatenate([a[l] for l in range(l_last)], axis=0)     # (l_last*c_last, bt)
    d1 = jnp.dot(fc1_w_ref[...], flat, preferred_element_type=jnp.float32) + fc1_b_ref[...]
    # decoding_layer2
    pred = jnp.dot(fc2_w_ref[...], d1, preferred_element_type=jnp.float32) + fc2_b_ref[...]
    out_ref[...] = pred.astype(out_ref.dtype)                          # (O, bt) lane-dense


def cnn_net_forward(x, params, *, layers, ksize, b_tile=None):
    B, L0 = x.shape
    H = params["fc1_w"].shape[2]
    O = params["fc2_w"].shape[1]

    # ---- fold BatchNorm (inference running stats) into conv weights/biases, and
    # ---- re-lay weights for the (L, C, B) kernel layout (pure layout plumbing). ----
    kernel_inputs = []
    for i in range(layers):
        w = params[f"w{i}"].astype(jnp.float32)          # (K, Cin, Cout)
        b = params[f"b{i}"].astype(jnp.float32)          # (1, Cout)
        if i < layers - 1:
            scale = params[f"gamma{i}"] * jax.lax.rsqrt(params[f"var{i}"] + BN_EPS)  # (1, Cout)
            w = w * scale
            b = (b - params[f"mean{i}"]) * scale + params[f"beta{i}"]
        wt = jnp.transpose(w, (0, 2, 1))                 # (K, Cout, Cin)
        bt = jnp.transpose(b)                            # (Cout, 1)
        kernel_inputs += [wt, bt]

    l_last, c_last, _ = params["fc1_w"].shape
    # torch's channel-major flatten is folded into this layout; importing real torch
    # weights requires fc1_w[l, c, h] = W_torch[h, c*l_last + l].
    fc1_w2d = jnp.transpose(params["fc1_w"].reshape(l_last * c_last, H))   # (H, l_last*c_last)
    fc1_bT = jnp.transpose(params["fc1_b"])              # (H, 1)
    fc2_wT = jnp.transpose(params["fc2_w"])              # (O, H)
    fc2_bT = jnp.transpose(params["fc2_b"])              # (O, 1)
    kernel_inputs += [fc1_w2d, fc1_bT, fc2_wT, fc2_bT]

    # ---- batch tiling: batch lives on the 128-lane axis inside the kernel ----
    if b_tile is None:
        b_tile = 128 if B >= 128 else _round_up(B, 8)
    b_pad = _round_up(B, b_tile)
    x_pad = jnp.zeros((b_pad, L0), jnp.float32).at[:B].set(x.astype(jnp.float32))
    x_t = jnp.transpose(x_pad)[:, None, :]               # (L0, 1, B_pad), lane-dense in B

    def _full_spec(arr):
        nd = arr.ndim
        return pl.BlockSpec(arr.shape, lambda b, nd=nd: (0,) * nd)

    in_specs = [pl.BlockSpec((L0, 1, b_tile), lambda b: (0, 0, b))]
    in_specs += [_full_spec(a) for a in kernel_inputs]

    out = pl.pallas_call(
        functools.partial(_cnn_kernel, layers=layers, ksize=ksize),
        out_shape=jax.ShapeDtypeStruct((O, b_pad), jnp.float32),
        grid=(b_pad // b_tile,),
        in_specs=in_specs,
        out_specs=pl.BlockSpec((O, b_tile), lambda b: (0, b)),
        compiler_params=pltpu.CompilerParams(dimension_semantics=("parallel",)),
    )(x_t, *kernel_inputs)
    return jnp.transpose(out)[:B]                         # (B, O)


def init_params(key, *, input_shape, layers, output_features, out_channels, kernel_size):
    params = {}
    ks = jax.random.split(key, 2 * layers + 4)
    ki = 0
    c_in = 1
    for i in range(layers):
        c_out = out_channels[i]
        bound = 1.0 / np.sqrt(c_in * kernel_size)
        params[f"w{i}"] = jax.random.uniform(
            ks[ki], (kernel_size, c_in, c_out), jnp.float32, -bound, bound); ki += 1
        params[f"b{i}"] = jax.random.uniform(
            ks[ki], (1, c_out), jnp.float32, -bound, bound); ki += 1
        # BatchNorm1d default init: weight=1, bias=0, running_mean=0, running_var=1
        params[f"gamma{i}"] = jnp.ones((1, c_out), jnp.float32)
        params[f"beta{i}"] = jnp.zeros((1, c_out), jnp.float32)
        params[f"mean{i}"] = jnp.zeros((1, c_out), jnp.float32)
        params[f"var{i}"] = jnp.ones((1, c_out), jnp.float32)
        c_in = c_out
    flatten_size = get_size(input_shape, kernel_size, 3, layers)
    bound = 1.0 / np.sqrt(flatten_size * out_channels[-1])
    params["fc1_w"] = jax.random.uniform(
        ks[ki], (flatten_size, out_channels[-1], 128), jnp.float32, -bound, bound); ki += 1
    params["fc1_b"] = jax.random.uniform(ks[ki], (1, 128), jnp.float32, -bound, bound); ki += 1
    bound = 1.0 / np.sqrt(128)
    params["fc2_w"] = jax.random.uniform(
        ks[ki], (128, output_features), jnp.float32, -bound, bound); ki += 1
    params["fc2_b"] = jax.random.uniform(
        ks[ki], (1, output_features), jnp.float32, -bound, bound); ki += 1
    return params


def forward_ref(x, params, *, layers, ksize):
    """Pure-JAX reference (unfolded BN, channels-last), used only for correctness."""
    a = x[:, :, None].astype(jnp.float32)
    for i in range(layers):
        w, b = params[f"w{i}"], params[f"b{i}"]
        l_out = a.shape[1] - ksize + 1
        out = sum(jnp.einsum("blc,cd->bld", a[:, k:k + l_out, :], w[k])
                  for k in range(ksize)) + b[None, :, :]
        if i < layers - 1:
            g = params[f"gamma{i}"][None]; be = params[f"beta{i}"][None]
            mu = params[f"mean{i}"][None]; var = params[f"var{i}"][None]
            out = (out - mu) * jax.lax.rsqrt(var + BN_EPS) * g + be
            out = jnp.maximum(out, 0.0)
            P = (out.shape[1] - 3) // 3 + 1
            out = out[:, :3 * P, :].reshape(out.shape[0], P, 3, out.shape[2]).max(axis=2)
        a = out
    d1 = jnp.einsum("blc,lch->bh", a, params["fc1_w"]) + params["fc1_b"]
    return d1 @ params["fc2_w"] + params["fc2_b"]


if __name__ == "__main__":
    # Small config consistent with CNN_Net(input_shape, layers, output_features,
    # out_channels, kernel_size)
    B = 2
    input_shape = 32
    layers = 2
    output_features = 3
    out_channels = [4, 8]
    kernel_size = 3

    key = jax.random.PRNGKey(0)
    kx, kp = jax.random.split(key)
    x = jax.random.normal(kx, (B, input_shape), jnp.float32)
    params = init_params(kp, input_shape=input_shape, layers=layers,
                         output_features=output_features,
                         out_channels=out_channels, kernel_size=kernel_size)

    out = cnn_net_forward(x, params, layers=layers, ksize=kernel_size)
    out = jax.block_until_ready(out)

    ref = forward_ref(x, params, layers=layers, ksize=kernel_size)
    assert out.shape == (B, output_features)
    np.testing.assert_allclose(np.asarray(out), np.asarray(ref), rtol=1e-4, atol=1e-4)
    print("KERNEL_OK")
</pallas_src>

<mosaic_0001>
module attributes {stable_mosaic.version = 11 : i64} {
  func.func @_cnn_kernel(%arg0: i32, %arg1: memref<32x1x8xf32, #tpu.memory_space<vmem>>, %arg2: memref<3x4x1xf32, #tpu.memory_space<vmem>>, %arg3: memref<4x1xf32, #tpu.memory_space<vmem>>, %arg4: memref<3x8x4xf32, #tpu.memory_space<vmem>>, %arg5: memref<8x1xf32, #tpu.memory_space<vmem>>, %arg6: memref<128x64xf32, #tpu.memory_space<vmem>>, %arg7: memref<128x1xf32, #tpu.memory_space<vmem>>, %arg8: memref<3x128xf32, #tpu.memory_space<vmem>>, %arg9: memref<3x1xf32, #tpu.memory_space<vmem>>, %arg10: memref<3x8xf32, #tpu.memory_space<vmem>>) attributes {dimension_semantics = [#tpu.dimension_semantics<parallel>], iteration_bounds = array<i64: 1>, scalar_prefetch = 0 : i64, scratch_operands = 0 : i64, tpu.core_type = #tpu.core_type<tc>, window_params = [{transform_indices = @transform_0, window_bounds = array<i64: 32, 1, 8>}, {pipeline_mode = #tpu.pipeline_mode<synchronous>, transform_indices = @transform_1, window_bounds = array<i64: 3, 4, 1>}, {pipeline_mode = #tpu.pipeline_mode<synchronous>, transform_indices = @transform_2, window_bounds = array<i64: 4, 1>}, {pipeline_mode = #tpu.pipeline_mode<synchronous>, transform_indices = @transform_3, window_bounds = array<i64: 3, 8, 4>}, {pipeline_mode = #tpu.pipeline_mode<synchronous>, transform_indices = @transform_4, window_bounds = array<i64: 8, 1>}, {pipeline_mode = #tpu.pipeline_mode<synchronous>, transform_indices = @transform_5, window_bounds = array<i64: 128, 64>}, {pipeline_mode = #tpu.pipeline_mode<synchronous>, transform_indices = @transform_6, window_bounds = array<i64: 128, 1>}, {pipeline_mode = #tpu.pipeline_mode<synchronous>, transform_indices = @transform_7, window_bounds = array<i64: 3, 128>}, {pipeline_mode = #tpu.pipeline_mode<synchronous>, transform_indices = @transform_8, window_bounds = array<i64: 3, 1>}, {transform_indices = @transform_9, window_bounds = array<i64: 3, 8>}]} {
    %c0 = arith.constant 0 : index
    %c0_0 = arith.constant 0 : index
    %c0_1 = arith.constant 0 : index
    %0 = vector.load %arg1[%c0, %c0_0, %c0_1] : memref<32x1x8xf32, #tpu.memory_space<vmem>>, vector<32x1x8xf32>
    %cst = arith.constant 0.000000e+00 : f32
    %1 = vector.broadcast %cst : f32 to vector<30x4x8xf32>
    %2 = vector.extract_strided_slice %0 {offsets = [0, 0, 0], sizes = [30, 1, 8], strides = [1, 1, 1]} : vector<32x1x8xf32> to vector<30x1x8xf32>
    %c0_2 = arith.constant 0 : index
    %c0_3 = arith.constant 0 : index
    %c0_4 = arith.constant 0 : index
    %3 = vector.load %arg2[%c0_2, %c0_3, %c0_4] : memref<3x4x1xf32, #tpu.memory_space<vmem>>, vector<1x4x1xf32>
    %4 = vector.shape_cast %3 : vector<1x4x1xf32> to vector<4x1xf32>
    %5 = vector.shape_cast %4 : vector<4x1xf32> to vector<1x4x1xf32>
    %6 = vector.broadcast %2 : vector<30x1x8xf32> to vector<30x4x8xf32>
    %7 = vector.broadcast %5 : vector<1x4x1xf32> to vector<30x4x8xf32>
    %8 = arith.mulf %6, %7 : vector<30x4x8xf32>
    %9 = arith.addf %1, %8 : vector<30x4x8xf32>
    %10 = vector.extract_strided_slice %0 {offsets = [1, 0, 0], sizes = [30, 1, 8], strides = [1, 1, 1]} : vector<32x1x8xf32> to vector<30x1x8xf32>
    %c1 = arith.constant 1 : index
    %c0_5 = arith.constant 0 : index
    %c0_6 = arith.constant 0 : index
    %11 = vector.load %arg2[%c1, %c0_5, %c0_6] : memref<3x4x1xf32, #tpu.memory_space<vmem>>, vector<1x4x1xf32>
    %12 = vector.shape_cast %11 : vector<1x4x1xf32> to vector<4x1xf32>
    %13 = vector.shape_cast %12 : vector<4x1xf32> to vector<1x4x1xf32>
    %14 = vector.broadcast %10 : vector<30x1x8xf32> to vector<30x4x8xf32>
    %15 = vector.broadcast %13 : vector<1x4x1xf32> to vector<30x4x8xf32>
    %16 = arith.mulf %14, %15 : vector<30x4x8xf32>
    %17 = arith.addf %9, %16 : vector<30x4x8xf32>
    %18 = vector.extract_strided_slice %0 {offsets = [2, 0, 0], sizes = [30, 1, 8], strides = [1, 1, 1]} : vector<32x1x8xf32> to vector<30x1x8xf32>
    %c2 = arith.constant 2 : index
    %c0_7 = arith.constant 0 : index
    %c0_8 = arith.constant 0 : index
    %19 = vector.load %arg2[%c2, %c0_7, %c0_8] : memref<3x4x1xf32, #tpu.memory_space<vmem>>, vector<1x4x1xf32>
    %20 = vector.shape_cast %19 : vector<1x4x1xf32> to vector<4x1xf32>
    %21 = vector.shape_cast %20 : vector<4x1xf32> to vector<1x4x1xf32>
    %22 = vector.broadcast %18 : vector<30x1x8xf32> to vector<30x4x8xf32>
    %23 = vector.broadcast %21 : vector<1x4x1xf32> to vector<30x4x8xf32>
    %24 = arith.mulf %22, %23 : vector<30x4x8xf32>
    %25 = arith.addf %17, %24 : vector<30x4x8xf32>
    %c0_9 = arith.constant 0 : index
    %c0_10 = arith.constant 0 : index
    %26 = vector.load %arg3[%c0_9, %c0_10] : memref<4x1xf32, #tpu.memory_space<vmem>>, vector<4x1xf32>
    %27 = vector.shape_cast %26 : vector<4x1xf32> to vector<1x4x1xf32>
    %28 = vector.broadcast %27 : vector<1x4x1xf32> to vector<30x4x8xf32>
    %29 = arith.addf %25, %28 : vector<30x4x8xf32>
    %cst_11 = arith.constant 0.000000e+00 : f32
    %30 = vector.broadcast %cst_11 : f32 to vector<30x4x8xf32>
    %31 = arith.maximumf %29, %30 : vector<30x4x8xf32>
    %32 = vector.shape_cast %31 : vector<30x4x8xf32> to vector<10x3x4x8xf32>
    %33 = vector.extract_strided_slice %32 {offsets = [0, 0, 0, 0], sizes = [10, 1, 4, 8], strides = [1, 1, 1, 1]} : vector<10x3x4x8xf32> to vector<10x1x4x8xf32>
    %34 = vector.shape_cast %33 : vector<10x1x4x8xf32> to vector<10x4x8xf32>
    %35 = vector.extract_strided_slice %32 {offsets = [0, 1, 0, 0], sizes = [10, 1, 4, 8], strides = [1, 1, 1, 1]} : vector<10x3x4x8xf32> to vector<10x1x4x8xf32>
    %36 = vector.shape_cast %35 : vector<10x1x4x8xf32> to vector<10x4x8xf32>
    %37 = arith.maximumf %34, %36 : vector<10x4x8xf32>
    %38 = vector.extract_strided_slice %32 {offsets = [0, 2, 0, 0], sizes = [10, 1, 4, 8], strides = [1, 1, 1, 1]} : vector<10x3x4x8xf32> to vector<10x1x4x8xf32>
    %39 = vector.shape_cast %38 : vector<10x1x4x8xf32> to vector<10x4x8xf32>
    %40 = arith.maximumf %37, %39 : vector<10x4x8xf32>
    %cst_12 = arith.constant 0.000000e+00 : f32
    %41 = vector.broadcast %cst_12 : f32 to vector<8x8x8xf32>
    %42 = vector.extract_strided_slice %40 {offsets = [0, 0, 0], sizes = [8, 4, 8], strides = [1, 1, 1]} : vector<10x4x8xf32> to vector<8x4x8xf32>
    %c0_13 = arith.constant 0 : index
    %c0_14 = arith.constant 0 : index
    %c0_15 = arith.constant 0 : index
    %43 = vector.load %arg4[%c0_13, %c0_14, %c0_15] : memref<3x8x4xf32, #tpu.memory_space<vmem>>, vector<1x8x4xf32>
    %44 = vector.shape_cast %43 : vector<1x8x4xf32> to vector<8x4xf32>
    %45 = vector.extract_strided_slice %42 {offsets = [0, 0, 0], sizes = [8, 1, 8], strides = [1, 1, 1]} : vector<8x4x8xf32> to vector<8x1x8xf32>
    %46 = vector.extract_strided_slice %44 {offsets = [0, 0], sizes = [8, 1], strides = [1, 1]} : vector<8x4xf32> to vector<8x1xf32>
    %47 = vector.shape_cast %46 : vector<8x1xf32> to vector<1x8x1xf32>
    %48 = vector.broadcast %45 : vector<8x1x8xf32> to vector<8x8x8xf32>
    %49 = vector.broadcast %47 : vector<1x8x1xf32> to vector<8x8x8xf32>
    %50 = arith.mulf %48, %49 : vector<8x8x8xf32>
    %51 = arith.addf %41, %50 : vector<8x8x8xf32>
    %52 = vector.extract_strided_slice %42 {offsets = [0, 1, 0], sizes = [8, 1, 8], strides = [1, 1, 1]} : vector<8x4x8xf32> to vector<8x1x8xf32>
    %53 = vector.extract_strided_slice %44 {offsets = [0, 1], sizes = [8, 1], strides = [1, 1]} : vector<8x4xf32> to vector<8x1xf32>
    %54 = vector.shape_cast %53 : vector<8x1xf32> to vector<1x8x1xf32>
    %55 = vector.broadcast %52 : vector<8x1x8xf32> to vector<8x8x8xf32>
    %56 = vector.broadcast %54 : vector<1x8x1xf32> to vector<8x8x8xf32>
    %57 = arith.mulf %55, %56 : vector<8x8x8xf32>
    %58 = arith.addf %51, %57 : vector<8x8x8xf32>
    %59 = vector.extract_strided_slice %42 {offsets = [0, 2, 0], sizes = [8, 1, 8], strides = [1, 1, 1]} : vector<8x4x8xf32> to vector<8x1x8xf32>
    %60 = vector.extract_strided_slice %44 {offsets = [0, 2], sizes = [8, 1], strides = [1, 1]} : vector<8x4xf32> to vector<8x1xf32>
    %61 = vector.shape_cast %60 : vector<8x1xf32> to vector<1x8x1xf32>
    %62 = vector.broadcast %59 : vector<8x1x8xf32> to vector<8x8x8xf32>
    %63 = vector.broadcast %61 : vector<1x8x1xf32> to vector<8x8x8xf32>
    %64 = arith.mulf %62, %63 : vector<8x8x8xf32>
    %65 = arith.addf %58, %64 : vector<8x8x8xf32>
    %66 = vector.extract_strided_slice %42 {offsets = [0, 3, 0], sizes = [8, 1, 8], strides = [1, 1, 1]} : vector<8x4x8xf32> to vector<8x1x8xf32>
    %67 = vector.extract_strided_slice %44 {offsets = [0, 3], sizes = [8, 1], strides = [1, 1]} : vector<8x4xf32> to vector<8x1xf32>
    %68 = vector.shape_cast %67 : vector<8x1xf32> to vector<1x8x1xf32>
    %69 = vector.broadcast %66 : vector<8x1x8xf32> to vector<8x8x8xf32>
    %70 = vector.broadcast %68 : vector<1x8x1xf32> to vector<8x8x8xf32>
    %71 = arith.mulf %69, %70 : vector<8x8x8xf32>
    %72 = arith.addf %65, %71 : vector<8x8x8xf32>
    %73 = vector.extract_strided_slice %40 {offsets = [1, 0, 0], sizes = [8, 4, 8], strides = [1, 1, 1]} : vector<10x4x8xf32> to vector<8x4x8xf32>
    %c1_16 = arith.constant 1 : index
    %c0_17 = arith.constant 0 : index
    %c0_18 = arith.constant 0 : index
    %74 = vector.load %arg4[%c1_16, %c0_17, %c0_18] : memref<3x8x4xf32, #tpu.memory_space<vmem>>, vector<1x8x4xf32>
    %75 = vector.shape_cast %74 : vector<1x8x4xf32> to vector<8x4xf32>
    %76 = vector.extract_strided_slice %73 {offsets = [0, 0, 0], sizes = [8, 1, 8], strides = [1, 1, 1]} : vector<8x4x8xf32> to vector<8x1x8xf32>
    %77 = vector.extract_strided_slice %75 {offsets = [0, 0], sizes = [8, 1], strides = [1, 1]} : vector<8x4xf32> to vector<8x1xf32>
    %78 = vector.shape_cast %77 : vector<8x1xf32> to vector<1x8x1xf32>
    %79 = vector.broadcast %76 : vector<8x1x8xf32> to vector<8x8x8xf32>
    %80 = vector.broadcast %78 : vector<1x8x1xf32> to vector<8x8x8xf32>
    %81 = arith.mulf %79, %80 : vector<8x8x8xf32>
    %82 = arith.addf %72, %81 : vector<8x8x8xf32>
    %83 = vector.extract_strided_slice %73 {offsets = [0, 1, 0], sizes = [8, 1, 8], strides = [1, 1, 1]} : vector<8x4x8xf32> to vector<8x1x8xf32>
    %84 = vector.extract_strided_slice %75 {offsets = [0, 1], sizes = [8, 1], strides = [1, 1]} : vector<8x4xf32> to vector<8x1xf32>
    %85 = vector.shape_cast %84 : vector<8x1xf32> to vector<1x8x1xf32>
    %86 = vector.broadcast %83 : vector<8x1x8xf32> to vector<8x8x8xf32>
    %87 = vector.broadcast %85 : vector<1x8x1xf32> to vector<8x8x8xf32>
    %88 = arith.mulf %86, %87 : vector<8x8x8xf32>
    %89 = arith.addf %82, %88 : vector<8x8x8xf32>
    %90 = vector.extract_strided_slice %73 {offsets = [0, 2, 0], sizes = [8, 1, 8], strides = [1, 1, 1]} : vector<8x4x8xf32> to vector<8x1x8xf32>
    %91 = vector.extract_strided_slice %75 {offsets = [0, 2], sizes = [8, 1], strides = [1, 1]} : vector<8x4xf32> to vector<8x1xf32>
    %92 = vector.shape_cast %91 : vector<8x1xf32> to vector<1x8x1xf32>
    %93 = vector.broadcast %90 : vector<8x1x8xf32> to vector<8x8x8xf32>
    %94 = vector.broadcast %92 : vector<1x8x1xf32> to vector<8x8x8xf32>
    %95 = arith.mulf %93, %94 : vector<8x8x8xf32>
    %96 = arith.addf %89, %95 : vector<8x8x8xf32>
    %97 = vector.extract_strided_slice %73 {offsets = [0, 3, 0], sizes = [8, 1, 8], strides = [1, 1, 1]} : vector<8x4x8xf32> to vector<8x1x8xf32>
    %98 = vector.extract_strided_slice %75 {offsets = [0, 3], sizes = [8, 1], strides = [1, 1]} : vector<8x4xf32> to vector<8x1xf32>
    %99 = vector.shape_cast %98 : vector<8x1xf32> to vector<1x8x1xf32>
    %100 = vector.broadcast %97 : vector<8x1x8xf32> to vector<8x8x8xf32>
    %101 = vector.broadcast %99 : vector<1x8x1xf32> to vector<8x8x8xf32>
    %102 = arith.mulf %100, %101 : vector<8x8x8xf32>
    %103 = arith.addf %96, %102 : vector<8x8x8xf32>
    %104 = vector.extract_strided_slice %40 {offsets = [2, 0, 0], sizes = [8, 4, 8], strides = [1, 1, 1]} : vector<10x4x8xf32> to vector<8x4x8xf32>
    %c2_19 = arith.constant 2 : index
    %c0_20 = arith.constant 0 : index
    %c0_21 = arith.constant 0 : index
    %105 = vector.load %arg4[%c2_19, %c0_20, %c0_21] : memref<3x8x4xf32, #tpu.memory_space<vmem>>, vector<1x8x4xf32>
    %106 = vector.shape_cast %105 : vector<1x8x4xf32> to vector<8x4xf32>
    %107 = vector.extract_strided_slice %104 {offsets = [0, 0, 0], sizes = [8, 1, 8], strides = [1, 1, 1]} : vector<8x4x8xf32> to vector<8x1x8xf32>
    %108 = vector.extract_strided_slice %106 {offsets = [0, 0], sizes = [8, 1], strides = [1, 1]} : vector<8x4xf32> to vector<8x1xf32>
    %109 = vector.shape_cast %108 : vector<8x1xf32> to vector<1x8x1xf32>
    %110 = vector.broadcast %107 : vector<8x1x8xf32> to vector<8x8x8xf32>
    %111 = vector.broadcast %109 : vector<1x8x1xf32> to vector<8x8x8xf32>
    %112 = arith.mulf %110, %111 : vector<8x8x8xf32>
    %113 = arith.addf %103, %112 : vector<8x8x8xf32>
    %114 = vector.extract_strided_slice %104 {offsets = [0, 1, 0], sizes = [8, 1, 8], strides = [1, 1, 1]} : vector<8x4x8xf32> to vector<8x1x8xf32>
    %115 = vector.extract_strided_slice %106 {offsets = [0, 1], sizes = [8, 1], strides = [1, 1]} : vector<8x4xf32> to vector<8x1xf32>
    %116 = vector.shape_cast %115 : vector<8x1xf32> to vector<1x8x1xf32>
    %117 = vector.broadcast %114 : vector<8x1x8xf32> to vector<8x8x8xf32>
    %118 = vector.broadcast %116 : vector<1x8x1xf32> to vector<8x8x8xf32>
    %119 = arith.mulf %117, %118 : vector<8x8x8xf32>
    %120 = arith.addf %113, %119 : vector<8x8x8xf32>
    %121 = vector.extract_strided_slice %104 {offsets = [0, 2, 0], sizes = [8, 1, 8], strides = [1, 1, 1]} : vector<8x4x8xf32> to vector<8x1x8xf32>
    %122 = vector.extract_strided_slice %106 {offsets = [0, 2], sizes = [8, 1], strides = [1, 1]} : vector<8x4xf32> to vector<8x1xf32>
    %123 = vector.shape_cast %122 : vector<8x1xf32> to vector<1x8x1xf32>
    %124 = vector.broadcast %121 : vector<8x1x8xf32> to vector<8x8x8xf32>
    %125 = vector.broadcast %123 : vector<1x8x1xf32> to vector<8x8x8xf32>
    %126 = arith.mulf %124, %125 : vector<8x8x8xf32>
    %127 = arith.addf %120, %126 : vector<8x8x8xf32>
    %128 = vector.extract_strided_slice %104 {offsets = [0, 3, 0], sizes = [8, 1, 8], strides = [1, 1, 1]} : vector<8x4x8xf32> to vector<8x1x8xf32>
    %129 = vector.extract_strided_slice %106 {offsets = [0, 3], sizes = [8, 1], strides = [1, 1]} : vector<8x4xf32> to vector<8x1xf32>
    %130 = vector.shape_cast %129 : vector<8x1xf32> to vector<1x8x1xf32>
    %131 = vector.broadcast %128 : vector<8x1x8xf32> to vector<8x8x8xf32>
    %132 = vector.broadcast %130 : vector<1x8x1xf32> to vector<8x8x8xf32>
    %133 = arith.mulf %131, %132 : vector<8x8x8xf32>
    %134 = arith.addf %127, %133 : vector<8x8x8xf32>
    %c0_22 = arith.constant 0 : index
    %c0_23 = arith.constant 0 : index
    %135 = vector.load %arg5[%c0_22, %c0_23] : memref<8x1xf32, #tpu.memory_space<vmem>>, vector<8x1xf32>
    %136 = vector.shape_cast %135 : vector<8x1xf32> to vector<1x8x1xf32>
    %137 = vector.broadcast %136 : vector<1x8x1xf32> to vector<8x8x8xf32>
    %138 = arith.addf %134, %137 : vector<8x8x8xf32>
    %139 = vector.extract_strided_slice %138 {offsets = [0, 0, 0], sizes = [1, 8, 8], strides = [1, 1, 1]} : vector<8x8x8xf32> to vector<1x8x8xf32>
    %140 = vector.shape_cast %139 : vector<1x8x8xf32> to vector<8x8xf32>
    %141 = vector.extract_strided_slice %138 {offsets = [1, 0, 0], sizes = [1, 8, 8], strides = [1, 1, 1]} : vector<8x8x8xf32> to vector<1x8x8xf32>
    %142 = vector.shape_cast %141 : vector<1x8x8xf32> to vector<8x8xf32>
    %143 = vector.extract_strided_slice %138 {offsets = [2, 0, 0], sizes = [1, 8, 8], strides = [1, 1, 1]} : vector<8x8x8xf32> to vector<1x8x8xf32>
    %144 = vector.shape_cast %143 : vector<1x8x8xf32> to vector<8x8xf32>
    %145 = vector.extract_strided_slice %138 {offsets = [3, 0, 0], sizes = [1, 8, 8], strides = [1, 1, 1]} : vector<8x8x8xf32> to vector<1x8x8xf32>
    %146 = vector.shape_cast %145 : vector<1x8x8xf32> to vector<8x8xf32>
    %147 = vector.extract_strided_slice %138 {offsets = [4, 0, 0], sizes = [1, 8, 8], strides = [1, 1, 1]} : vector<8x8x8xf32> to vector<1x8x8xf32>
    %148 = vector.shape_cast %147 : vector<1x8x8xf32> to vector<8x8xf32>
    %149 = vector.extract_strided_slice %138 {offsets = [5, 0, 0], sizes = [1, 8, 8], strides = [1, 1, 1]} : vector<8x8x8xf32> to vector<1x8x8xf32>
    %150 = vector.shape_cast %149 : vector<1x8x8xf32> to vector<8x8xf32>
    %151 = vector.extract_strided_slice %138 {offsets = [6, 0, 0], sizes = [1, 8, 8], strides = [1, 1, 1]} : vector<8x8x8xf32> to vector<1x8x8xf32>
    %152 = vector.shape_cast %151 : vector<1x8x8xf32> to vector<8x8xf32>
    %153 = vector.extract_strided_slice %138 {offsets = [7, 0, 0], sizes = [1, 8, 8], strides = [1, 1, 1]} : vector<8x8x8xf32> to vector<1x8x8xf32>
    %154 = vector.shape_cast %153 : vector<1x8x8xf32> to vector<8x8xf32>
    %155 = tpu.concatenate %140, %142, %144, %146, %148, %150, %152, %154 in 0 : vector<8x8xf32>, vector<8x8xf32>, vector<8x8xf32>, vector<8x8xf32>, vector<8x8xf32>, vector<8x8xf32>, vector<8x8xf32>, vector<8x8xf32> -> vector<64x8xf32>
    %c0_24 = arith.constant 0 : index
    %c0_25 = arith.constant 0 : index
    %156 = vector.load %arg6[%c0_24, %c0_25] : memref<128x64xf32, #tpu.memory_space<vmem>>, vector<128x64xf32>
    %cst_26 = arith.constant dense<0.000000e+00> : vector<128x8xf32>
    %157 = tpu.matmul %156, %155, %cst_26 {dimension_numbers = #tpu.dot_dimension_numbers<[1], [0], [0], [1], [0, 0, 1, 1], [], []>} : vector<128x64xf32>, vector<64x8xf32>, vector<128x8xf32> -> vector<128x8xf32>
    %c0_27 = arith.constant 0 : index
    %c0_28 = arith.constant 0 : index
    %158 = vector.load %arg7[%c0_27, %c0_28] : memref<128x1xf32, #tpu.memory_space<vmem>>, vector<128x1xf32>
    %159 = vector.broadcast %158 : vector<128x1xf32> to vector<128x8xf32>
    %160 = arith.addf %157, %159 : vector<128x8xf32>
    %c0_29 = arith.constant 0 : index
    %c0_30 = arith.constant 0 : index
    %161 = vector.load %arg8[%c0_29, %c0_30] : memref<3x128xf32, #tpu.memory_space<vmem>>, vector<3x128xf32>
    %cst_31 = arith.constant dense<0.000000e+00> : vector<3x8xf32>
    %162 = tpu.matmul %161, %160, %cst_31 {dimension_numbers = #tpu.dot_dimension_numbers<[1], [0], [0], [1], [0, 0, 1, 1], [], []>} : vector<3x128xf32>, vector<128x8xf32>, vector<3x8xf32> -> vector<3x8xf32>
    %c0_32 = arith.constant 0 : index
    %c0_33 = arith.constant 0 : index
    %163 = vector.load %arg9[%c0_32, %c0_33] : memref<3x1xf32, #tpu.memory_space<vmem>>, vector<3x1xf32>
    %164 = vector.broadcast %163 : vector<3x1xf32> to vector<3x8xf32>
    %165 = arith.addf %162, %164 : vector<3x8xf32>
    %c0_34 = arith.constant 0 : index
    %c0_35 = arith.constant 0 : index
    %166 = vector.load %arg10[%c0_34, %c0_35] : memref<3x8xf32, #tpu.memory_space<vmem>>, vector<3x8xf32>
    tpu.vector_store %arg10[%c0_34, %c0_35], %165 {strides = array<i32>} : memref<3x8xf32, #tpu.memory_space<vmem>>, vector<3x8xf32>,
    return
  }
  func.func @transform_0(%arg0: i32) -> (i32, i32, i32) {
    %c0_i32 = arith.constant 0 : i32
    %c0_i32_0 = arith.constant 0 : i32
    %c0_i32_1 = arith.constant 0 : i32
    return %c0_i32, %c0_i32_0, %arg0 : i32, i32, i32
  }
  func.func @transform_1(%arg0: i32) -> (i32, i32, i32) {
    %c0_i32 = arith.constant 0 : i32
    %c0_i32_0 = arith.constant 0 : i32
    %c0_i32_1 = arith.constant 0 : i32
    %c0_i32_2 = arith.constant 0 : i32
    return %c0_i32, %c0_i32_0, %c0_i32_1 : i32, i32, i32
  }
  func.func @transform_2(%arg0: i32) -> (i32, i32) {
    %c0_i32 = arith.constant 0 : i32
    %c0_i32_0 = arith.constant 0 : i32
    %c0_i32_1 = arith.constant 0 : i32
    return %c0_i32, %c0_i32_0 : i32, i32
  }
  func.func @transform_3(%arg0: i32) -> (i32, i32, i32) {
    %c0_i32 = arith.constant 0 : i32
    %c0_i32_0 = arith.constant 0 : i32
    %c0_i32_1 = arith.constant 0 : i32
    %c0_i32_2 = arith.constant 0 : i32
    return %c0_i32, %c0_i32_0, %c0_i32_1 : i32, i32, i32
  }
  func.func @transform_4(%arg0: i32) -> (i32, i32) {
    %c0_i32 = arith.constant 0 : i32
    %c0_i32_0 = arith.constant 0 : i32
    %c0_i32_1 = arith.constant 0 : i32
    return %c0_i32, %c0_i32_0 : i32, i32
  }
  func.func @transform_5(%arg0: i32) -> (i32, i32) {
    %c0_i32 = arith.constant 0 : i32
    %c0_i32_0 = arith.constant 0 : i32
    %c0_i32_1 = arith.constant 0 : i32
    return %c0_i32, %c0_i32_0 : i32, i32
  }
  func.func @transform_6(%arg0: i32) -> (i32, i32) {
    %c0_i32 = arith.constant 0 : i32
    %c0_i32_0 = arith.constant 0 : i32
    %c0_i32_1 = arith.constant 0 : i32
    return %c0_i32, %c0_i32_0 : i32, i32
  }
  func.func @transform_7(%arg0: i32) -> (i32, i32) {
    %c0_i32 = arith.constant 0 : i32
    %c0_i32_0 = arith.constant 0 : i32
    %c0_i32_1 = arith.constant 0 : i32
    return %c0_i32, %c0_i32_0 : i32, i32
  }
  func.func @transform_8(%arg0: i32) -> (i32, i32) {
    %c0_i32 = arith.constant 0 : i32
    %c0_i32_0 = arith.constant 0 : i32
    %c0_i32_1 = arith.constant 0 : i32
    return %c0_i32, %c0_i32_0 : i32, i32
  }
  func.func @transform_9(%arg0: i32) -> (i32, i32) {
    %c0_i32 = arith.constant 0 : i32
    %c0_i32_0 = arith.constant 0 : i32
    return %c0_i32, %arg0 : i32, i32
  }
}

</mosaic_0001>

<bundles_post_ra>
// kernel: tpu_custom_call.1
= control target key start
LH: loop header
LB: loop body
LE: loop exit
PB: predicated region body
PF: predicated region fallthrough
CT: control target
= control target key end

     0   :  { %v1619_v2 = vmov 0   ;;  %v1620_v6 = vmov 1   ;;  %v1621_v7 = vmov 2   ;;  %s2485_s0 = inlined_call_operand.vmem [shape: f32[32,1,8], index: 0, kind: input, shape index: {}]   ;;  %s2486_s1 = inlined_call_operand.vmem [shape: f32[3,4,1], index: 1, kind: input, shape index: {}]   ;;  %s2487_s2 = inlined_call_operand.vmem [shape: f32[4,1], index: 2, kind: input, shape index: {}]   ;;  %s2488_s3 = inlined_call_operand.vmem [shape: f32[3,8,4], index: 3, kind: input, shape index: {}]   ;;  %s2489_s4 = inlined_call_operand.vmem [shape: f32[8,1], index: 4, kind: input, shape index: {}]   ;;  %s2490_s5 = inlined_call_operand.vmem [shape: f32[128,64], index: 5, kind: input, shape index: {}]   ;;  %s2491_s6 = inlined_call_operand.vmem [shape: f32[128,1], index: 6, kind: input, shape index: {}]   ;;  %s2492_s7 = inlined_call_operand.vmem [shape: f32[3,128], index: 7, kind: input, shape index: {}]   ;;  %s2493_s8 = inlined_call_operand.vmem [shape: f32[3,1], index: 8, kind: input, shape index: {}]   ;;  %s2494_s9 = inlined_call_operand.hbm [shape: f32[3,8], index: 9, kind: output, shape index: {}]  }
   0x1   :  { %v1396_v0 = vld [vmem:[%s2486_s1 + $0x8] sm:$0xf]  ;;  %v65_v1 = vld [vmem:[%s2486_s1] sm:$0xf]  ;;  %1581 = vset.pattern.permute.xlu1 %v1619_v2  ;;  %1580 = vset.pattern.permute.xlu0 %v1619_v2  ;;  %v1394_v4 = vld [vmem:[%s2486_s1 + $0x4] sm:$0xf] }
   0x2   :  { %394 = vperm.xlu1 %1581, %v1396_v0   ;;  %248 = vperm.xlu0 %1580, %v65_v1   ;;  %v457_v3 = vld [vmem:[%s2487_s2] sm:$0xf] }
   0x3   :  { %v543_v5 = vld [vmem:[%s2488_s3] sm:$0xff] }
   0x6   :  { %460 = vperm.xlu1 %1581, %v457_v3   ;;  %321 = vperm.xlu0 %1580, %v1394_v4  }
   0xa   :  { %1582 = vset.pattern.permute.xlu1 %v1620_v6  ;;  %578 = vperm.xlu0 %1580, %v543_v5  }
   0xb   :  { %630 = vperm.xlu1 %1582, %v543_v5  }
   0xe   :  { %1583 = vset.pattern.permute.xlu0 %v1621_v7 }
   0xf   :  { %14 = vsyncpa [#allocation3], 0  ;;  %v1622_v8 = vmov 3   ;;  %682 = vperm.xlu0 %1583, %v543_v5   ;;  %v1398_v9 = vld [vmem:[%s2488_s3 + $0x8] sm:$0xff]  ;;  %v1399_v10 = vld [vmem:[%s2488_s3 + $0x10] sm:$0xff]  ;;  %v544_v21 = vlaneseq  ;;  %vm1077_vm0 = vcmask 523264  }
  0x10   :  { %1584 = vset.pattern.permute.xlu1 %v1622_v8  ;;  %v951_v11 = vld [vmem:[%s2489_s4] sm:$0xff]  ;;  %v983_v13 = vld [vmem:[%s2491_s6 + $0x10] sm:$0xff]  ;;  %v984_v14 = vld [vmem:[%s2491_s6 + $0x18] sm:$0xff]  ;;  %vm1624_vm1 = vmmov 0   ;;  %s1626_s3 = smov [#allocation2]   ;;  %vm1348_vm2 = vcmask 59392  }
  0x11   :  { %734 = vperm.xlu1 %1584, %v543_v5   ;;  %v981_v12 = vld [vmem:[%s2491_s6] sm:$0xff]  ;;  %v986_v15 = vld [vmem:[%s2491_s6 + $0x28] sm:$0xff]  ;;  %v988_v16 = vld [vmem:[%s2491_s6 + $0x38] sm:$0xff]  ;;  %v1728_v22 = vshrl.u32 %v544_v21, 7  ;;  %s1356_s23 = sshll.u32 %s1626_s3, 4  ;;  %s1357_s23 = int_to_ptr.vmem [resolvable:$true] %s1356_s23 }
  0x12   :  { %v990_v17 = vld [vmem:[%s2491_s6 + $0x48] sm:$0xff]  ;;  %v992_v18 = vld [vmem:[%s2491_s6 + $0x58] sm:$0xff]  ;;  %v1364_v23 = vld [vmem:[%s2485_s0] ss:$0 sm:$0xff]  ;;  %s1595_s24 = scalar_lea.vmem %s1357_s23, 64  ;;  %p1600_p1 = scmp.lt.s32.totalorder %s1357_s23, %s1357_s23 }
  0x13   :  { %1586 = vset.pattern.permute.xlu0 %v1620_v6  ;;  %v994_v19 = vld [vmem:[%s2491_s6 + $0x68] sm:$0xff]  ;;  %v996_v20 = vld [vmem:[%s2491_s6 + $0x78] sm:$0xff]  ;;  %2520 = vst [vmem:[#allocation5_spill] sm:$0xff] %v1728_v22  ;;  %v1365_v24 = vld [vmem:[%s2485_s0 + $0x1] ss:$0 sm:$0xff]  ;;  %v1752_v28 = vsub.s32 0, %v1728_v22  ;;  %p1596_p0 = scmp.ne.s32.totalorder %s1357_s23, %s1595_s24  ;;  %p1601_p2 = scmp.lt.s32.totalorder %s1595_s24, %s1595_s24 }
  0x14   :  { %785 = vperm.xlu0 %1586, %v1398_v9   ;;  %v1739_v25 = vld [vmem:[%s2485_s0 + $0x2] ss:$0 sm:$0xff]  ;;  %v1744_v26 = vld [vmem:[%s2485_s0 + $0x3] ss:$0 sm:$0xff]  ;;  %v1749_v27 = vld [vmem:[%s2485_s0 + $0x4] ss:$0 sm:$0xff] }
  0x15   :  { %1585 = vset.pattern.permute.xlu1 %v1619_v2  ;;  %2521 = vst [vmem:[#allocation6_spill] sm:$0xff] %v1752_v28  ;;  %v1757_v29 = vld [vmem:[%s2485_s0 + $0x5] ss:$0 sm:$0xff]  ;;  %v1762_v30 = vld [vmem:[%s2485_s0 + $0xc] ss:$0 sm:$0xff]  ;;  %v1809_v42 = vsub.s32 1, %v1728_v22  ;;  %p1602_p3 = por %p1601_p2, %p1600_p1 }
  0x16   :  { %761 = vperm.xlu1 %1585, %v1398_v9   ;;  %2522 = vst [vmem:[#allocation7_spill] sm:$0xff] %v1762_v30  ;;  %v1767_v31 = vld [vmem:[%s2485_s0 + $0xd] ss:$0 sm:$0xff]  ;;  %v1772_v32 = vld [vmem:[%s2485_s0 + $0xe] ss:$0 sm:$0xff]  ;;  %v1812_v43 = vsub.s32 3, %v1728_v22 }
  0x17   :  { %2523 = vst [vmem:[#allocation8_spill] sm:$0xff] %v1767_v31  ;;  %v1777_v33 = vld [vmem:[%s2485_s0 + $0xf] ss:$0 sm:$0xff]  ;;  %v1784_v35 = vld [vmem:[%s2485_s0 + $0x10] ss:$0 sm:$0xff]  ;;  %2525 = vst [vmem:[#allocation10_spill] sm:$0xff] %v1809_v42  ;;  %p1603_p4 = pnand %p1602_p3, %p1596_p0 }
  0x18   :  { %1589 = vset.pattern.permute.xlu0 %v1619_v2  ;;  %v1789_v36 = vld [vmem:[%s2485_s0 + $0x11] ss:$0 sm:$0xff]  ;;  %v1794_v37 = vld [vmem:[%s2485_s0 + $0x12] ss:$0 sm:$0xff]  ;;  %v1799_v38 = vld [vmem:[%s2485_s0 + $0x13] ss:$0 sm:$0xff] }
  0x19   :  { %860 = vperm.xlu0 %1589, %v1399_v10   ;;  %v1804_v39 = vld [vmem:[%s2485_s0 + $0x14] ss:$0 sm:$0xff]  ;;  %2526 = vst [vmem:[#allocation11_spill] sm:$0xff] %v1812_v43  ;;  %v1817_v44 = vld [vmem:[%s2485_s0 + $0x15] ss:$0 sm:$0xff] }
  0x1a   :  { %1587 = vset.pattern.permute.xlu1 %v1621_v7  ;;  %2527 = vst [vmem:[#allocation12_spill] sm:$0xff] %v1817_v44  ;;  %v1822_v45 = vld [vmem:[%s2485_s0 + $0x16] ss:$0 sm:$0xff]  ;;  %v1827_v46 = vld [vmem:[%s2485_s0 + $0x17] ss:$0 sm:$0xff] }
  0x1b   :  { %809 = vperm.xlu1 %1587, %v1398_v9   ;;  %2528 = vst [vmem:[#allocation13_spill] sm:$0xff] %v1822_v45  ;;  %2529 = vst [vmem:[#allocation14_spill] sm:$0xff] %v1827_v46  ;;  %v1866_v0 = vld [vmem:[%s2485_s0 + $0x6] ss:$0 sm:$0xff] }
  0x1d   :  { %1592 = vset.pattern.permute.xlu0 %v1622_v8 }
  0x1e   :  { %932 = vperm.xlu0 %1592, %v1399_v10  }
  0x1f   :  { %1588 = vset.pattern.permute.xlu1 %v1622_v8 }
  0x20   :  { %833 = vperm.xlu1 %1588, %v1398_v9  }
  0x22   :  { %1594 = vset.pattern.permute.xlu0 %v1619_v2 }
  0x24   :  { %1590 = vset.pattern.permute.xlu1 %v1620_v6 }
  0x25   :  { %884 = vperm.xlu1 %1590, %v1399_v10  }
  0x29   :  { %1591 = vset.pattern.permute.xlu1 %v1621_v7 }
  0x2a   :  { %908 = vperm.xlu1 %1591, %v1399_v10  }
  0x2e   :  { %1593 = vset.pattern.permute.xlu1 %v1619_v2 }
  0x2f   :  { %954 = vperm.xlu1 %1593, %v951_v11  }
  0x33   :  { %999 = vperm.xlu1 %1593, %v981_v12  }
  0x37   :  { %1009 = vperm.xlu1 %1593, %v983_v13   ;;  %v1894_v13 = vld [vmem:[%s2485_s0 + $0x18] ss:$0 sm:$0xff] }
  0x38   :  { %2531 = vst [vmem:[#allocation16_spill] sm:$0xff] %v1894_v13 }
  0x3b   :  { %1014 = vperm.xlu1 %1593, %v984_v14  }
  0x3f   :  { %1024 = vperm.xlu1 %1593, %v986_v15  }
  0x43   :  { %1034 = vperm.xlu1 %1593, %v988_v16  }
  0x47   :  { %1044 = vperm.xlu1 %1593, %v990_v17  }
  0x4b   :  { %1054 = vperm.xlu1 %1593, %v992_v18  }
  0x4f   :  { %1064 = vperm.xlu1 %1593, %v994_v19  }
  0x53   :  { %1074 = vperm.xlu1 %1593, %v996_v20  }
  0x81   :  { %v1779_v34 = vpop.permute.xlu0 %248  ;;  %v1908_v43 = vpop.permute.xlu1 %394 }
  0x82   :  { %2524 = vst [vmem:[#allocation9_spill] sm:$0xff] %v1779_v34  ;;  %v251_v40 = vmul.f32 %v1364_v23, %v1779_v34  ;;  %v252_v41 = vmul.f32 %v1365_v24, %v1779_v34  ;;  %v253_v47 = vmul.f32 %v1739_v25, %v1779_v34  ;;  %v254_v48 = vmul.f32 %v1744_v26, %v1779_v34 }
  0x83   :  { %v255_v49 = vmul.f32 %v1749_v27, %v1779_v34  ;;  %v256_v50 = vmul.f32 %v1757_v29, %v1779_v34  ;;  %v263_v51 = vmul.f32 %v1762_v30, %v1779_v34  ;;  %v264_v52 = vmul.f32 %v1767_v31, %v1779_v34  ;;  %2532 = vst [vmem:[#allocation17_spill] sm:$0xff] %v1908_v43 }
  0x84   :  { %v265_v53 = vmul.f32 %v1772_v32, %v1779_v34  ;;  %v266_v54 = vmul.f32 %v1777_v33, %v1779_v34  ;;  %v267_v56 = vmul.f32 %v1784_v35, %v1779_v34  ;;  %v268_v57 = vmul.f32 %v1789_v36, %v1779_v34 }
  0x85   :  { %v1845_v55 = vpop.permute.xlu0 %321  ;;  %v269_v58 = vmul.f32 %v1794_v37, %v1779_v34  ;;  %v270_v59 = vmul.f32 %v1799_v38, %v1779_v34  ;;  %v271_v60 = vmul.f32 %v1804_v39, %v1779_v34  ;;  %v272_v61 = vmul.f32 %v1817_v44, %v1779_v34 }
  0x86   :  { %2530 = vst [vmem:[#allocation15_spill] sm:$0xff] %v1845_v55  ;;  %v273_v62 = vmul.f32 %v1822_v45, %v1779_v34  ;;  %v274_v63 = vmul.f32 %v1827_v46, %v1779_v34  ;;  %v324_v1 = vmul.f32 %v1365_v24, %v1845_v55  ;;  %v325_v2 = vmul.f32 %v1739_v25, %v1845_v55 }
  0x87   :  { %v326_v3 = vmul.f32 %v1744_v26, %v1845_v55  ;;  %v327_v4 = vmul.f32 %v1749_v27, %v1845_v55  ;;  %v328_v5 = vmul.f32 %v1757_v29, %v1845_v55  ;;  %v329_v6 = vmul.f32 %v1866_v0, %v1845_v55 }
  0x88   :  { %v336_v7 = vmul.f32 %v1767_v31, %v1845_v55  ;;  %v337_v8 = vmul.f32 %v1772_v32, %v1845_v55  ;;  %v338_v9 = vmul.f32 %v1777_v33, %v1845_v55  ;;  %v339_v10 = vmul.f32 %v1784_v35, %v1845_v55 }
  0x89   :  { %v340_v11 = vmul.f32 %v1789_v36, %v1845_v55  ;;  %v341_v12 = vmul.f32 %v1794_v37, %v1845_v55  ;;  %v342_v14 = vmul.f32 %v1799_v38, %v1845_v55  ;;  %v343_v15 = vmul.f32 %v1804_v39, %v1845_v55 }
  0x8a   :  { %v344_v16 = vmul.f32 %v1817_v44, %v1845_v55  ;;  %v345_v17 = vmul.f32 %v1822_v45, %v1845_v55  ;;  %v346_v18 = vmul.f32 %v1827_v46, %v1845_v55  ;;  %v347_v19 = vmul.f32 %v1894_v13, %v1845_v55  ;;  %v1913_v45 = vld [vmem:[%s2485_s0 + $0x7] ss:$0 sm:$0xff] }
  0x8b   :  { %v354_v20 = vadd.f32 %v324_v1, %v251_v40  ;;  %v355_v21 = vadd.f32 %v325_v2, %v252_v41  ;;  %v356_v23 = vadd.f32 %v326_v3, %v253_v47  ;;  %v357_v24 = vadd.f32 %v327_v4, %v254_v48 }
  0x8c   :  { %v358_v31 = vadd.f32 %v328_v5, %v255_v49  ;;  %v359_v30 = vadd.f32 %v329_v6, %v256_v50  ;;  %v366_v34 = vadd.f32 %v336_v7, %v263_v51  ;;  %v367_v42 = vadd.f32 %v337_v8, %v264_v52  ;;  %v1956_v5 = vpop.permute.xlu1 %460 }
  0x8d   :  { %v368_v28 = vadd.f32 %v338_v9, %v265_v53  ;;  %v369_v22 = vadd.f32 %v339_v10, %v266_v54  ;;  %v370_v46 = vadd.f32 %v340_v11, %v267_v56  ;;  %v371_v44 = vadd.f32 %v341_v12, %v268_v57  ;;  %v1926_v54 = vld [vmem:[%s2485_s0 + $0x19] ss:$0 sm:$0xff] }
  0x8e   :  { %v372_v55 = vadd.f32 %v342_v14, %v269_v58  ;;  %v373_v40 = vadd.f32 %v343_v15, %v270_v59  ;;  %v374_v41 = vadd.f32 %v344_v16, %v271_v60  ;;  %v375_v47 = vadd.f32 %v345_v17, %v272_v61  ;;  %2533 = vst [vmem:[#allocation18_spill] sm:$0xff] %v1926_v54 }
  0x8f   :  { %v376_v48 = vadd.f32 %v346_v18, %v273_v62  ;;  %v377_v49 = vadd.f32 %v347_v19, %v274_v63  ;;  %v397_v50 = vmul.f32 %v1739_v25, %v1908_v43  ;;  %v398_v51 = vmul.f32 %v1744_v26, %v1908_v43 }
  0x90   :  { %v399_v52 = vmul.f32 %v1749_v27, %v1908_v43  ;;  %v400_v53 = vmul.f32 %v1757_v29, %v1908_v43  ;;  %v401_v56 = vmul.f32 %v1866_v0, %v1908_v43  ;;  %v402_v25 = vmul.f32 %v1913_v45, %v1908_v43 }
  0x91   :  { %v409_v26 = vmul.f32 %v1772_v32, %v1908_v43  ;;  %v410_v27 = vmul.f32 %v1777_v33, %v1908_v43  ;;  %v411_v29 = vmul.f32 %v1784_v35, %v1908_v43  ;;  %v412_v57 = vmul.f32 %v1789_v36, %v1908_v43  ;;  %v2534_v32 = vld [vmem:[#allocation12_spill] sm:$0xff]  ;;  %v2535_v33 = vld [vmem:[#allocation13_spill] sm:$0xff]  ;;  %v2536_v35 = vld [vmem:[#allocation14_spill] sm:$0xff] }
  0x92   :  { %v413_v58 = vmul.f32 %v1794_v37, %v1908_v43  ;;  %v414_v59 = vmul.f32 %v1799_v38, %v1908_v43  ;;  %v415_v60 = vmul.f32 %v1804_v39, %v1908_v43  ;;  %v416_v61 = vmul.f32 %v2534_v32, %v1908_v43  ;;  %2537 = vst [vmem:[#allocation12_spill] sm:$0xff] %v1956_v5 }
  0x93   :  { %v417_v62 = vmul.f32 %v2535_v33, %v1908_v43  ;;  %v418_v63 = vmul.f32 %v2536_v35, %v1908_v43  ;;  %v419_v36 = vmul.f32 %v1894_v13, %v1908_v43  ;;  %v420_v37 = vmul.f32 %v1926_v54, %v1908_v43 }
  0x94   :  { %v427_v1 = vadd.f32 %v397_v50, %v354_v20  ;;  %v428_v38 = vadd.f32 %v398_v51, %v355_v21  ;;  %v429_v2 = vadd.f32 %v399_v52, %v356_v23  ;;  %v430_v3 = vadd.f32 %v400_v53, %v357_v24 }
  0x95   :  { %v431_v39 = vadd.f32 %v401_v56, %v358_v31  ;;  %v432_v4 = vadd.f32 %v402_v25, %v359_v30  ;;  %v439_v6 = vadd.f32 %v409_v26, %v366_v34  ;;  %v440_v7 = vadd.f32 %v410_v27, %v367_v42 }
  0x96   :  { %v441_v8 = vadd.f32 %v411_v29, %v368_v28  ;;  %v442_v9 = vadd.f32 %v412_v57, %v369_v22  ;;  %v443_v10 = vadd.f32 %v413_v58, %v370_v46  ;;  %v444_v11 = vadd.f32 %v414_v59, %v371_v44 }
  0x97   :  { %v445_v12 = vadd.f32 %v415_v60, %v372_v55  ;;  %v446_v14 = vadd.f32 %v416_v61, %v373_v40  ;;  %v447_v15 = vadd.f32 %v417_v62, %v374_v41  ;;  %v448_v16 = vadd.f32 %v418_v63, %v375_v47  ;;  %v1974_v47 = vpop.permute.xlu1 %630 }
  0x98   :  { %v449_v17 = vadd.f32 %v419_v36, %v376_v48  ;;  %v450_v18 = vadd.f32 %v420_v37, %v377_v49  ;;  %v463_v19 = vadd.f32 %v1956_v5, %v427_v1  ;;  %v464_v20 = vadd.f32 %v1956_v5, %v428_v38 }
  0x99   :  { %v465_v30 = vadd.f32 %v1956_v5, %v429_v2  ;;  %v466_v31 = vadd.f32 %v1956_v5, %v430_v3  ;;  %v467_v34 = vadd.f32 %v1956_v5, %v431_v39  ;;  %v468_v22 = vadd.f32 %v1956_v5, %v432_v4 }
  0x9a   :  { %v475_v28 = vadd.f32 %v1956_v5, %v439_v6  ;;  %v476_v42 = vadd.f32 %v1956_v5, %v440_v7  ;;  %v477_v44 = vadd.f32 %v1956_v5, %v441_v8  ;;  %v478_v46 = vadd.f32 %v1956_v5, %v442_v9  ;;  %v2538_v9 = vld [vmem:[#allocation5_spill] sm:$0xff] }
  0x9b   :  { %v479_v55 = vadd.f32 %v1956_v5, %v443_v10  ;;  %v480_v21 = vadd.f32 %v1956_v5, %v444_v11  ;;  %v481_v23 = vadd.f32 %v1956_v5, %v445_v12  ;;  %v482_v24 = vadd.f32 %v1956_v5, %v446_v14  ;;  %v1978_v38 = vpop.permute.xlu1 %734  ;;  %v2539_v12 = vld [vmem:[#allocation6_spill] sm:$0xff] }
  0x9c   :  { %v483_v40 = vadd.f32 %v1956_v5, %v447_v15  ;;  %v484_v41 = vadd.f32 %v1956_v5, %v448_v16  ;;  %v485_v48 = vadd.f32 %v1956_v5, %v449_v17  ;;  %v493_v49 = vmax.f32 %v463_v19, 0.0  ;;  %v2540_v16 = vld [vmem:[#allocation10_spill] sm:$0xff]  ;;  %v2004_v19 = vpop.permute.xlu0 %578 }
  0x9d   :  { %v494_v50 = vmax.f32 %v464_v20, 0.0  ;;  %v496_v51 = vmax.f32 %v466_v31, 0.0  ;;  %v486_v52 = vadd.f32 %v1956_v5, %v450_v18  ;;  %v497_v53 = vmax.f32 %v467_v34, 0.0  ;;  %v1372_v18 = vld [vmem:[%s2485_s0 + $0x8] ss:$0 sm:$0xff] }
  0x9e   :  { %v505_v56 = vmax.f32 %v475_v28, 0.0  ;;  %v506_v25 = vmax.f32 %v476_v42, 0.0  ;;  %v495_v26 = vmax.f32 %v465_v30, 0.0  ;;  %v498_v27 = vmax.f32 %v468_v22, 0.0 }
  0x9f   :  { %v508_v29 = vmax.f32 %v478_v46, 0.0  ;;  %v509_v57 = vmax.f32 %v479_v55, 0.0  ;;  %v507_v58 = vmax.f32 %v477_v44, 0.0  ;;  %v511_v59 = vmax.f32 %v481_v23, 0.0  ;;  %v982_v46 = vld [vmem:[%s2491_s6 + $0x8] sm:$0xff] }
  0xa0   :  { %v512_v60 = vmax.f32 %v482_v24, 0.0  ;;  %v514_v32 = vmax.f32 %v484_v41, 0.0  ;;  %v510_v61 = vmax.f32 %v480_v21, 0.0  ;;  %v515_v33 = vmax.f32 %v485_v48, 0.0  ;;  %v2034_v21 = vpop.permute.xlu1 %761  ;;  %v1373_v23 = vld [vmem:[%s2485_s0 + $0x9] ss:$0 sm:$0xff]  ;;  %1004 = vperm.xlu0 %1594, %v982_v46  }
  0xa1   :  { %v523_v62 = vmax.f32 %v493_v49, %v494_v50  ;;  %v524_v35 = vmax.f32 %v496_v51, %v497_v53  ;;  %v513_v63 = vmax.f32 %v483_v40, 0.0  ;;  %v527_v36 = vmax.f32 %v505_v56, %v506_v25  ;;  %v2542_v24 = vld [vmem:[#allocation9_spill] sm:$0xff] }
  0xa2   :  { %v528_v37 = vmax.f32 %v508_v29, %v509_v57  ;;  %v529_v1 = vmax.f32 %v511_v59, %v512_v60  ;;  %v516_v2 = vmax.f32 %v486_v52, 0.0  ;;  %v530_v3 = vmax.f32 %v514_v32, %v515_v33  ;;  %v1375_v53 = vld [vmem:[%s2485_s0 + $0xb] ss:$0 sm:$0xff]  ;;  %v985_v56 = vld [vmem:[%s2491_s6 + $0x20] sm:$0xff]  ;;  %v2545_v29 = vld [vmem:[#allocation11_spill] sm:$0xff] }
  0xa3   :  { %v1980_v39 = vmax.f32 %v523_v62, %v495_v26  ;;  %v1982_v4 = vmax.f32 %v524_v35, %v498_v27  ;;  %v1984_v6 = vmax.f32 %v527_v36, %v507_v58  ;;  %v1991_v10 = vsub.s32 2, %v2538_v9  ;;  %v2073_v58 = vpop.permute.xlu0 %682 }
  0xa4   :  { %v1986_v7 = vmax.f32 %v528_v37, %v510_v61  ;;  %v1988_v8 = vmax.f32 %v529_v1, %v513_v63  ;;  %v1993_v11 = vmax.f32 %v530_v3, %v516_v2  ;;  %v257_v40 = vmul.f32 %v1866_v0, %v2542_v24  ;;  %v1374_v0 = vld [vmem:[%s2485_s0 + $0xa] ss:$0 sm:$0xff]  ;;  %v2547_v63 = vld [vmem:[#allocation15_spill] sm:$0xff]  ;;  %1019 = vperm.xlu0 %1594, %v985_v56  }
  0xa5   :  { %v547_v14 = vrot.slane %v1980_v39, %v2539_v12  ;;  %v551_v15 = vrot.slane %v1982_v4, %v2539_v12  ;;  %v600_v17 = vrot.slane %v1980_v39, %v2540_v16  ;;  %v2008_v20 = vrot.slane %v1984_v6, %v2539_v12 }
  0xa6   :  { %v2012_v30 = vrot.slane %v1986_v7, %v2539_v12  ;;  %v2016_v31 = vrot.slane %v1988_v8, %v2539_v12  ;;  %v2020_v34 = vrot.slane %v1982_v4, %v2540_v16  ;;  %v2024_v22 = vrot.slane %v1993_v11, %v2539_v12 }
  0xa7   :  { %v581_v28 = vmul.f32 %v2004_v19, %v547_v14  ;;  %v582_v42 = vmul.f32 %v2004_v19, %v551_v15  ;;  %v633_v44 = vmul.f32 %v1974_v47, %v600_v17  ;;  %v258_v41 = vmul.f32 %v1913_v45, %v2542_v24  ;;  %v2548_v14 = vld [vmem:[#allocation7_spill] sm:$0xff] }
  0xa8   :  { %2541 = vst [vmem:[#allocation13_spill] sm:$0xff] %v2016_v31  ;;  %v634_v55 = vmul.f32 %v1974_v47, %v2020_v34  ;;  %v259_v48 = vmul.f32 %v1372_v18, %v2542_v24  ;;  %v2046_v49 = vmul.f32 %v2004_v19, %v2008_v20  ;;  %v2050_v50 = vmul.f32 %v2004_v19, %v2012_v30 }
  0xa9   :  { %v641_v51 = vadd.f32 %v633_v44, %v581_v28  ;;  %v652_v52 = vrot.slane %v1980_v39, %v1991_v10  ;;  %v2065_v25 = vmul.f32 %v2004_v19, %v2016_v31  ;;  %v2069_v26 = vmul.f32 %v2004_v19, %v2024_v22 }
  0xaa   :  { %v642_v27 = vadd.f32 %v634_v55, %v582_v42  ;;  %v704_v57 = vrot.slane %v1980_v39, %v2545_v29  ;;  %v764_v60 = vmul.f32 %v2034_v21, %v551_v15  ;;  %v2079_v32 = vmul.f32 %v2034_v21, %v2008_v20  ;;  %v987_v39 = vld [vmem:[%s2491_s6 + $0x30] sm:$0xff]  ;;  %v2101_v55 = vpop.permute.xlu1 %809 }
  0xab   :  { %2543 = vst [vmem:[#allocation14_spill] sm:$0xff] %v2065_v25  ;;  %2544 = vst [vmem:[#allocation5_spill] sm:$0xff] %v2069_v26  ;;  %v685_v59 = vmul.f32 %v2073_v58, %v652_v52  ;;  %v2083_v61 = vmul.f32 %v2034_v21, %v2012_v30  ;;  %v260_v33 = vmul.f32 %v1373_v23, %v2542_v24  ;;  %1029 = vperm.xlu0 %1594, %v987_v39  }
  0xac   :  { %v261_v62 = vmul.f32 %v1374_v0, %v2542_v24  ;;  %v262_v35 = vmul.f32 %v1375_v53, %v2542_v24  ;;  %v330_v36 = vmul.f32 %v1913_v45, %v2547_v63  ;;  %v331_v1 = vmul.f32 %v1372_v18, %v2547_v63 }
  0xad   :  { %2546 = vst [vmem:[#allocation10_spill] sm:$0xff] %v2083_v61  ;;  %v693_v37 = vadd.f32 %v685_v59, %v641_v51  ;;  %v332_v2 = vmul.f32 %v1373_v23, %v2547_v63  ;;  %v333_v3 = vmul.f32 %v1374_v0, %v2547_v63  ;;  %v334_v9 = vmul.f32 %v1375_v53, %v2547_v63 }
  0xae   :  { %v335_v15 = vmul.f32 %v2548_v14, %v2547_v63  ;;  %v360_v17 = vadd.f32 %v330_v36, %v257_v40  ;;  %v403_v45 = vmul.f32 %v1372_v18, %v1908_v43  ;;  %v361_v28 = vadd.f32 %v331_v1, %v258_v41  ;;  %v2549_v40 = vld [vmem:[#allocation8_spill] sm:$0xff] }
  0xaf   :  { %v362_v42 = vadd.f32 %v332_v2, %v259_v48  ;;  %v363_v44 = vadd.f32 %v333_v3, %v260_v33  ;;  %v404_v46 = vmul.f32 %v1373_v23, %v1908_v43  ;;  %v364_v51 = vadd.f32 %v334_v9, %v261_v62  ;;  %v989_v23 = vld [vmem:[%s2491_s6 + $0x40] sm:$0xff] }
  0xb0   :  { %v365_v52 = vadd.f32 %v335_v15, %v262_v35  ;;  %v405_v56 = vmul.f32 %v1374_v0, %v1908_v43  ;;  %v406_v59 = vmul.f32 %v1375_v53, %v1908_v43  ;;  %v407_v63 = vmul.f32 %v2548_v14, %v1908_v43  ;;  %1039 = vperm.xlu0 %1594, %v989_v23   ;;  %v2122_v15 = vpop.permute.xlu0 %785 }
  0xb1   :  { %v408_v18 = vmul.f32 %v2549_v40, %v1908_v43  ;;  %v433_v41 = vadd.f32 %v403_v45, %v360_v17  ;;  %v434_v48 = vadd.f32 %v404_v46, %v361_v28  ;;  %v656_v0 = vrot.slane %v1982_v4, %v1991_v10  ;;  %v991_v28 = vld [vmem:[%s2491_s6 + $0x50] sm:$0xff] }
  0xb2   :  { %v435_v33 = vadd.f32 %v405_v56, %v362_v42  ;;  %v436_v62 = vadd.f32 %v406_v59, %v363_v44  ;;  %v708_v53 = vrot.slane %v1982_v4, %v2545_v29  ;;  %v437_v35 = vadd.f32 %v407_v63, %v364_v51 }
  0xb3   :  { %v438_v36 = vadd.f32 %v408_v18, %v365_v52  ;;  %v469_v1 = vadd.f32 %v1956_v5, %v433_v41  ;;  %v470_v2 = vadd.f32 %v1956_v5, %v434_v48  ;;  %v737_v3 = vmul.f32 %v1978_v38, %v704_v57  ;;  %v2129_v57 = vpop.permute.xlu1 %833 }
  0xb4   :  { %v471_v39 = vadd.f32 %v1956_v5, %v435_v33  ;;  %v472_v9 = vadd.f32 %v1956_v5, %v436_v62  ;;  %v686_v14 = vmul.f32 %v2073_v58, %v656_v0  ;;  %v473_v17 = vadd.f32 %v1956_v5, %v437_v35  ;;  %1049 = vperm.xlu0 %1594, %v991_v28   ;;  %v993_v35 = vld [vmem:[%s2491_s6 + $0x60] sm:$0xff] }
  0xb5   :  { %v474_v4 = vadd.f32 %v1956_v5, %v438_v36  ;;  %v499_v63 = vmax.f32 %v469_v1, 0.0  ;;  %v500_v45 = vmax.f32 %v470_v2, 0.0  ;;  %v738_v46 = vmul.f32 %v1978_v38, %v708_v53 }
  0xb6   :  { %v502_v42 = vmax.f32 %v472_v9, 0.0  ;;  %v694_v44 = vadd.f32 %v686_v14, %v642_v27  ;;  %v745_v51 = vadd.f32 %v737_v3, %v693_v37  ;;  %v2134_v52 = vmul.f32 %v2034_v21, %v2016_v31 }
  0xb7   :  { %v501_v56 = vmax.f32 %v471_v39, 0.0  ;;  %v503_v59 = vmax.f32 %v473_v17, 0.0  ;;  %v525_v40 = vmax.f32 %v499_v63, %v500_v45  ;;  %v504_v18 = vmax.f32 %v474_v4, 0.0  ;;  %v2167_v4 = vpop.permute.xlu1 %884 }
  0xb8   :  { %2550 = vst [vmem:[#allocation11_spill] sm:$0xff] %v2134_v52  ;;  %v746_v41 = vadd.f32 %v738_v46, %v694_v44  ;;  %v772_v48 = vadd.f32 %v764_v60, %v745_v51  ;;  %v788_v23 = vmul.f32 %v2122_v15, %v2020_v34  ;;  %v812_v27 = vmul.f32 %v2101_v55, %v656_v0  ;;  %v995_v44 = vld [vmem:[%s2491_s6 + $0x70] sm:$0xff]  ;;  %v2176_v46 = vpop.permute.xlu0 %860 }
  0xb9   :  { %v526_v33 = vmax.f32 %v502_v42, %v503_v59  ;;  %v535_v62 = vmax.f32 %v525_v40, %v501_v56  ;;  %v836_v37 = vmul.f32 %v2129_v57, %v708_v53  ;;  %v2145_v1 = vrot.slane %v1984_v6, %v2540_v16  ;;  %1059 = vperm.xlu0 %1594, %v993_v35  }
  0xba   :  { %v796_v36 = vadd.f32 %v788_v23, %v772_v48  ;;  %v2149_v60 = vrot.slane %v1986_v7, %v2540_v16  ;;  %v2153_v34 = vrot.slane %v1984_v6, %v1991_v10  ;;  %v2161_v14 = vrot.slane %v1986_v7, %v1991_v10 }
  0xbb   :  { %v536_v0 = vmax.f32 %v526_v33, %v504_v18  ;;  %v555_v53 = vrot.slane %v535_v62, %v2539_v12  ;;  %v608_v2 = vrot.slane %v535_v62, %v2540_v16  ;;  %v660_v3 = vrot.slane %v535_v62, %v1991_v10  ;;  %v2199_v13 = vpop.permute.xlu1 %908 }
  0xbc   :  { %v712_v39 = vrot.slane %v535_v62, %v2545_v29  ;;  %v820_v9 = vadd.f32 %v812_v27, %v796_v36  ;;  %v2165_v17 = vrot.slane %v1984_v6, %v2545_v29  ;;  %v637_v59 = vmul.f32 %v1974_v47, %v2145_v1 }
  0xbd   :  { %v559_v63 = vrot.slane %v536_v0, %v2539_v12  ;;  %v583_v45 = vmul.f32 %v2004_v19, %v555_v53  ;;  %v612_v28 = vrot.slane %v536_v0, %v2540_v16  ;;  %v635_v42 = vmul.f32 %v1974_v47, %v608_v2  ;;  %1069 = vperm.xlu0 %1594, %v995_v44  }
  0xbe   :  { %v664_v6 = vrot.slane %v536_v0, %v1991_v10  ;;  %v687_v51 = vmul.f32 %v2073_v58, %v660_v3  ;;  %v716_v56 = vrot.slane %v536_v0, %v2545_v29  ;;  %v765_v23 = vmul.f32 %v2034_v21, %v555_v53 }
  0xbf   :  { %v584_v40 = vmul.f32 %v2004_v19, %v559_v63  ;;  %v636_v18 = vmul.f32 %v1974_v47, %v612_v28  ;;  %v643_v48 = vadd.f32 %v635_v42, %v583_v45  ;;  %v739_v62 = vmul.f32 %v1978_v38, %v712_v39  ;;  %v1272_v45 = vld [vmem:[%s2493_s8] sm:$0x7] }
  0xc0   :  { %v688_v33 = vmul.f32 %v2073_v58, %v664_v6  ;;  %v740_v27 = vmul.f32 %v1978_v38, %v716_v56  ;;  %v638_v35 = vmul.f32 %v1974_v47, %v2149_v60  ;;  %v773_v12 = vadd.f32 %v765_v23, %v746_v41 }
  0xc1   :  { %v644_v36 = vadd.f32 %v636_v18, %v584_v40  ;;  %v695_v0 = vadd.f32 %v687_v51, %v643_v48  ;;  %v789_v19 = vmul.f32 %v2122_v15, %v608_v2  ;;  %v766_v42 = vmul.f32 %v2034_v21, %v559_v63  ;;  %v2201_v18 = vpop.permute.xlu0 %932  ;;  %1275 = vperm.xlu0 %1594, %v1272_v45  }
  0xc2   :  { %v790_v5 = vmul.f32 %v2122_v15, %v612_v28  ;;  %v813_v43 = vmul.f32 %v2101_v55, %v660_v3  ;;  %v814_v54 = vmul.f32 %v2101_v55, %v664_v6  ;;  %v844_v41 = vadd.f32 %v836_v37, %v820_v9 }
  0xc3   :  { %v696_v44 = vadd.f32 %v688_v33, %v644_v36  ;;  %v747_v40 = vadd.f32 %v739_v62, %v695_v0  ;;  %v797_v51 = vadd.f32 %v789_v19, %v773_v12  ;;  %v837_v48 = vmul.f32 %v2129_v57, %v712_v39 }
  0xc4   :  { %v838_v23 = vmul.f32 %v2129_v57, %v716_v56  ;;  %v863_v24 = vmul.f32 %v2176_v46, %v555_v53  ;;  %v864_v31 = vmul.f32 %v2176_v46, %v559_v63  ;;  %v887_v25 = vmul.f32 %v2167_v4, %v608_v2 }
  0xc5   :  { %v748_v26 = vadd.f32 %v740_v27, %v696_v44  ;;  %v774_v52 = vadd.f32 %v766_v42, %v747_v40  ;;  %v821_v61 = vadd.f32 %v813_v43, %v797_v51  ;;  %v888_v12 = vmul.f32 %v2167_v4, %v612_v28 }
  0xc6   :  { %v871_v33 = vadd.f32 %v863_v24, %v844_v41  ;;  %v911_v37 = vmul.f32 %v2199_v13, %v660_v3  ;;  %v912_v9 = vmul.f32 %v2199_v13, %v664_v6  ;;  %v935_v53 = vmul.f32 %v2201_v18, %v712_v39  ;;  %v2228_v39 = vpop.permute.xlu1 %954 }
  0xc7   :  { %v775_v62 = vadd.f32 %v2079_v32, %v748_v26  ;;  %v845_v36 = vadd.f32 %v837_v48, %v821_v61  ;;  %v645_v63 = vadd.f32 %v637_v59, %v2046_v49  ;;  %v646_v27 = vadd.f32 %v638_v35, %v2050_v50 }
  0xc8   :  { %v895_v0 = vadd.f32 %v887_v25, %v871_v33  ;;  %v689_v43 = vmul.f32 %v2073_v58, %v2153_v34  ;;  %v2219_v24 = vrot.slane %v1986_v7, %v2545_v29  ;;  %v936_v3 = vmul.f32 %v2201_v18, %v716_v56 }
  0xc9   :  { %v872_v2 = vadd.f32 %v864_v31, %v845_v36  ;;  %v791_v26 = vmul.f32 %v2122_v15, %v2145_v1  ;;  %v798_v32 = vadd.f32 %v790_v5, %v774_v52  ;;  %v690_v49 = vmul.f32 %v2073_v58, %v2161_v14 }
  0xca   :  { %v919_v61 = vadd.f32 %v911_v37, %v895_v0  ;;  %v697_v25 = vadd.f32 %v689_v43, %v645_v63  ;;  %v741_v50 = vmul.f32 %v1978_v38, %v2165_v17  ;;  %v815_v31 = vmul.f32 %v2101_v55, %v2153_v34 }
  0xcb   :  { %v896_v28 = vadd.f32 %v888_v12, %v872_v2  ;;  %v799_v7 = vadd.f32 %v791_v26, %v775_v62  ;;  %v822_v6 = vadd.f32 %v814_v54, %v798_v32  ;;  %v698_v59 = vadd.f32 %v690_v49, %v646_v27 }
  0xcc   :  { %v943_v56 = vadd.f32 %v935_v53, %v919_v61  ;;  %v742_v5 = vmul.f32 %v1978_v38, %v2219_v24  ;;  %v839_v52 = vmul.f32 %v2129_v57, %v2165_v17  ;;  %v865_v42 = vmul.f32 %v2176_v46, %v2008_v20  ;;  %v2551_v61 = vld [vmem:[#allocation14_spill] sm:$0xff] }
  0xcd   :  { %v920_v35 = vadd.f32 %v912_v9, %v896_v28  ;;  %v823_v19 = vadd.f32 %v815_v31, %v799_v7  ;;  %v846_v45 = vadd.f32 %v838_v23, %v822_v6  ;;  %v749_v40 = vadd.f32 %v741_v50, %v697_v25  ;;  %v2552_v6 = vld [vmem:[#allocation10_spill] sm:$0xff] }
  0xce   :  { %v957_v44 = vadd.f32 %v2228_v39, %v943_v56  ;;  %v866_v54 = vmul.f32 %v2176_v46, %v2012_v30  ;;  %v889_v51 = vmul.f32 %v2167_v4, %v2145_v1  ;;  %v913_v12 = vmul.f32 %v2199_v13, %v2153_v34  ;;  %v2553_v56 = vld [vmem:[#allocation11_spill] sm:$0xff] }
  0xcf   :  { %v944_v41 = vadd.f32 %v936_v3, %v920_v35  ;;  %v847_v48 = vadd.f32 %v839_v52, %v823_v19  ;;  %v873_v33 = vadd.f32 %v865_v42, %v846_v45  ;;  %v750_v37 = vadd.f32 %v742_v5, %v698_v59 }
  0xd0   :  { %v890_v23 = vmul.f32 %v2167_v4, %v2149_v60  ;;  %v914_v20 = vmul.f32 %v2199_v13, %v2161_v14  ;;  %v624_v9 = vrot.slane %v1988_v8, %v2540_v16  ;;  %v2254_v36 = vrot.slane %v1993_v11, %v2540_v16 }
  0xd1   :  { %v958_v30 = vadd.f32 %v2228_v39, %v944_v41  ;;  %v874_v62 = vadd.f32 %v866_v54, %v847_v48  ;;  %v897_v1 = vadd.f32 %v889_v51, %v873_v33  ;;  %v676_v53 = vrot.slane %v1988_v8, %v1991_v10  ;;  %v2555_v33 = vld [vmem:[#allocation13_spill] sm:$0xff] }
  0xd2   :  { %v639_v34 = vmul.f32 %v1974_v47, %v624_v9  ;;  %v2261_v63 = vrot.slane %v1993_v11, %v1991_v10  ;;  %v728_v0 = vrot.slane %v1988_v8, %v2545_v29  ;;  %v937_v3 = vmul.f32 %v2201_v18, %v2165_v17 }
  0xd3   :  { %v1532_v27 = vpack.c.bf16 %v958_v30, %v957_v44  ;;  %v898_v43 = vadd.f32 %v890_v23, %v874_v62  ;;  %v921_v2 = vadd.f32 %v913_v12, %v897_v1  ;;  %v2269_v26 = vmul.f32 %v2034_v21, %v2024_v22  ;;  %v1391_v62 = vld [vmem:[%s2485_s0 + $0x1b] ss:$0 sm:$0xff]  ;;  %v1392_v1 = vld [vmem:[%s2485_s0 + $0x1c] ss:$0 sm:$0xff] }
  0xd4   :  { %v640_v32 = vmul.f32 %v1974_v47, %v2254_v36  ;;  %v647_v49 = vadd.f32 %v639_v34, %v2551_v61  ;;  %v691_v25 = vmul.f32 %v2073_v58, %v676_v53  ;;  %v938_v8 = vmul.f32 %v2201_v18, %v2219_v24  ;;  %v2557_v61 = vld [vmem:[#allocation16_spill] sm:$0xff] }
  0xd5   :  { %1533 = vmatprep.subr.bf16.mxu0 %v1532_v27  ;;  %v922_v50 = vadd.f32 %v914_v20, %v898_v43  ;;  %v945_v28 = vadd.f32 %v937_v3, %v921_v2  ;;  %v2279_v17 = vmul.f32 %v2073_v58, %v2261_v63  ;;  %v743_v31 = vmul.f32 %v1978_v38, %v728_v0  ;;  %v2554_v58 = vld [vmem:[#allocation5_spill] sm:$0xff]  ;;  %v1393_v43 = vld [vmem:[%s2485_s0 + $0x1d] ss:$0 sm:$0xff] }
  0xd6   :  { %1535 = vmatpush3.bf16.msra.mxu0 %v1532_v27  ;;  %v699_v7 = vadd.f32 %v691_v25, %v647_v49  ;;  %v776_v47 = vadd.f32 %v2552_v6, %v749_v40  ;;  %v777_v59 = vadd.f32 %v2553_v56, %v750_v37  ;;  %v2287_v35 = vrot.slane %v1993_v11, %v2545_v29  ;;  %v2558_v25 = vld [vmem:[#allocation18_spill] sm:$0xff]  ;;  %v2559_v6 = vld [vmem:[#allocation15_spill] sm:$0xff] }
  0xd7   :  { %v946_v5 = vadd.f32 %v938_v8, %v922_v50  ;;  %v959_v52 = vadd.f32 %v2228_v39, %v945_v28  ;;  %v792_v19 = vmul.f32 %v2122_v15, %v2149_v60  ;;  %v2292_v45 = vadd.f32 %v640_v32, %v2554_v58  ;;  %v2556_v32 = vld [vmem:[#allocation9_spill] sm:$0xff] }
  0xd8   :  { %v2294_v42 = vadd.f32 %v743_v31, %v699_v7  ;;  %v793_v44 = vmul.f32 %v2122_v15, %v624_v9  ;;  %v816_v40 = vmul.f32 %v2101_v55, %v2161_v14  ;;  %v817_v41 = vmul.f32 %v2101_v55, %v676_v53 }
  0xd9   :  { %v960_v54 = vadd.f32 %v2228_v39, %v946_v5  ;;  %v800_v51 = vadd.f32 %v792_v19, %v776_v47  ;;  %v840_v11 = vmul.f32 %v2129_v57, %v2219_v24  ;;  %v841_v60 = vmul.f32 %v2129_v57, %v728_v0  ;;  %v1390_v24 = vld [vmem:[%s2485_s0 + $0x1a] ss:$0 sm:$0xff]  ;;  %v1395_v5 = vld [vmem:[%s2485_s0 + $0x1e] ss:$0 sm:$0xff] }
  0xda   :  { %v801_v48 = vadd.f32 %v793_v44, %v777_v59  ;;  %v867_v12 = vmul.f32 %v2176_v46, %v2555_v33  ;;  %v868_v37 = vmul.f32 %v2176_v46, %v2024_v22  ;;  %v891_v14 = vmul.f32 %v2167_v4, %v624_v9 }
  0xdb   :  { %v1536_v23 = vpack.c.bf16 %v960_v54, %v959_v52  ;;  %v824_v20 = vadd.f32 %v816_v40, %v800_v51  ;;  %v892_v30 = vmul.f32 %v2167_v4, %v2254_v36  ;;  %v915_v34 = vmul.f32 %v2199_v13, %v676_v53 }
  0xdc   :  { %v825_v22 = vadd.f32 %v817_v41, %v801_v48  ;;  %v916_v9 = vmul.f32 %v2199_v13, %v2261_v63  ;;  %v939_v27 = vmul.f32 %v2201_v18, %v728_v0  ;;  %v940_v3 = vmul.f32 %v2201_v18, %v2287_v35 }
  0xdd   :  { %1537 = vmatprep.subr.bf16.mxu0 %v1536_v23  ;;  %v848_v2 = vadd.f32 %v840_v11, %v824_v20  ;;  %v275_v49 = vmul.f32 %v2557_v61, %v2556_v32  ;;  %v276_v53 = vmul.f32 %v2558_v25, %v2556_v32  ;;  %v277_v8 = vmul.f32 %v1390_v24, %v2556_v32  ;;  %v1397_v11 = vld [vmem:[%s2485_s0 + $0x1f] ss:$0 sm:$0xff] }
  0xde   :  { %1539 = vmatpush3.bf16.msra.mxu0 %v1536_v23  ;;  %v849_v50 = vadd.f32 %v841_v60, %v825_v22  ;;  %v278_v0 = vmul.f32 %v1391_v62, %v2556_v32  ;;  %v279_v28 = vmul.f32 %v1392_v1, %v2556_v32  ;;  %v280_v31 = vmul.f32 %v1393_v43, %v2556_v32  ;;  %v2560_v23 = vld [vmem:[#allocation17_spill] sm:$0xff] }
  0xdf   :  { %v875_v7 = vadd.f32 %v867_v12, %v848_v2  ;;  %v348_v47 = vmul.f32 %v2558_v25, %v2559_v6  ;;  %v349_v56 = vmul.f32 %v1390_v24, %v2559_v6  ;;  %v350_v52 = vmul.f32 %v1391_v62, %v2559_v6 }
  0xe0   :  { %v876_v59 = vadd.f32 %v868_v37, %v849_v50  ;;  %v351_v19 = vmul.f32 %v1392_v1, %v2559_v6  ;;  %v352_v58 = vmul.f32 %v1393_v43, %v2559_v6  ;;  %v353_v40 = vmul.f32 %v1395_v5, %v2559_v6 }
  0xe1   :  { %v899_v44 = vadd.f32 %v891_v14, %v875_v7  ;;  %v378_v54 = vadd.f32 %v348_v47, %v275_v49  ;;  %v379_v51 = vadd.f32 %v349_v56, %v276_v53  ;;  %v380_v48 = vadd.f32 %v350_v52, %v277_v8 }
  0xe2   :  { %v900_v41 = vadd.f32 %v892_v30, %v876_v59  ;;  %v381_v60 = vadd.f32 %v351_v19, %v278_v0  ;;  %v382_v33 = vadd.f32 %v352_v58, %v279_v28  ;;  %v383_v37 = vadd.f32 %v353_v40, %v280_v31  ;;  %v965_v19 = vld [vmem:[%s2490_s5] sm:$0xff] }
  0xe3   :  { %v923_v12 = vadd.f32 %v915_v34, %v899_v44  ;;  %v421_v20 = vmul.f32 %v1390_v24, %v2560_v23  ;;  %v422_v22 = vmul.f32 %v1391_v62, %v2560_v23  ;;  %v423_v14 = vmul.f32 %v1392_v1, %v2560_v23  ;;  %v2561_v62 = vld [vmem:[#allocation12_spill] sm:$0xff]  ;;  %1473 = vmatprep.mubr.msk.f32.mxu0 %vm1077_vm0, %v965_v19  ;;  %v978_v19 = vld [vmem:[%s2490_s5 + $0x68] sm:$0xff] }
  0xe4   :  { %v924_v2 = vadd.f32 %v916_v9, %v900_v41  ;;  %v424_v32 = vmul.f32 %v1393_v43, %v2560_v23  ;;  %v425_v30 = vmul.f32 %v1395_v5, %v2560_v23  ;;  %v426_v49 = vmul.f32 %v1397_v11, %v2560_v23  ;;  %v2562_v11 = vld [vmem:[#allocation6_spill] sm:$0xff] }
  0xe5   :  { %v947_v61 = vadd.f32 %v939_v27, %v923_v12  ;;  %v451_v25 = vadd.f32 %v421_v20, %v378_v54  ;;  %v452_v53 = vadd.f32 %v422_v22, %v379_v51  ;;  %v453_v8 = vadd.f32 %v423_v14, %v380_v48 }
  0xe6   :  { %v948_v50 = vadd.f32 %v940_v3, %v924_v2  ;;  %v454_v34 = vadd.f32 %v424_v32, %v381_v60  ;;  %v455_v0 = vadd.f32 %v425_v30, %v382_v33  ;;  %v456_v28 = vadd.f32 %v426_v49, %v383_v37 }
  0xe7   :  { %v961_v24 = vadd.f32 %v2228_v39, %v947_v61  ;;  %v487_v9 = vadd.f32 %v2561_v62, %v451_v25  ;;  %v488_v1 = vadd.f32 %v2561_v62, %v452_v53  ;;  %v489_v7 = vadd.f32 %v2561_v62, %v453_v8 }
  0xe8   :  { %v962_v43 = vadd.f32 %v2228_v39, %v948_v50  ;;  %v490_v27 = vadd.f32 %v2561_v62, %v454_v34  ;;  %v491_v31 = vadd.f32 %v2561_v62, %v455_v0  ;;  %v778_v47 = vadd.f32 %v2269_v26, %v2294_v42 }
  0xe9   :  { %v517_v6 = vmax.f32 %v487_v9, 0.0  ;;  %v518_v3 = vmax.f32 %v488_v1, 0.0  ;;  %v700_v56 = vadd.f32 %v2279_v17, %v2292_v45  ;;  %v519_v58 = vmax.f32 %v489_v7, 0.0 }
  0xea   :  { %v1540_v59 = vpack.c.bf16 %v962_v43, %v961_v24  ;;  %v520_v5 = vmax.f32 %v490_v27, 0.0  ;;  %v521_v52 = vmax.f32 %v491_v31, 0.0  ;;  %v794_v40 = vmul.f32 %v2122_v15, %v2254_v36 }
  0xeb   :  { %v531_v44 = vmax.f32 %v517_v6, %v518_v3  ;;  %v744_v54 = vmul.f32 %v1978_v38, %v2287_v35  ;;  %v492_v26 = vadd.f32 %v2561_v62, %v456_v28  ;;  %v818_v42 = vmul.f32 %v2101_v55, %v2261_v63  ;;  %v971_v6 = vld [vmem:[%s2490_s5 + $0x30] sm:$0xff]  ;;  %v972_v3 = vld [vmem:[%s2490_s5 + $0x38] sm:$0xff] }
  0xec   :  { %1541 = vmatprep.subr.bf16.mxu0 %v1540_v59  ;;  %v802_v45 = vadd.f32 %v794_v40, %v778_v47  ;;  %v532_v41 = vmax.f32 %v520_v5, %v521_v52  ;;  %v842_v38 = vmul.f32 %v2129_v57, %v2287_v35  ;;  %v973_v47 = vld [vmem:[%s2490_s5 + $0x40] sm:$0xff]  ;;  %v976_v5 = vld [vmem:[%s2490_s5 + $0x58] sm:$0xff]  ;;  %v1623_v40 = vmov 0.0|0.0  }
  0xed   :  { %1543 = vmatpush3.bf16.msra.mxu0 %v1540_v59  ;;  %v541_v17 = vmax.f32 %v531_v44, %v519_v58  ;;  %v752_v51 = vadd.f32 %v744_v54, %v700_v56  ;;  %v522_v33 = vmax.f32 %v492_v26, 0.0  ;;  %v974_v56 = vld [vmem:[%s2490_s5 + $0x48] sm:$0xff]  ;;  %v975_v59 = vld [vmem:[%s2490_s5 + $0x50] sm:$0xff]  ;;  %v977_v52 = vld [vmem:[%s2490_s5 + $0x60] sm:$0xff]  ;;  %1548 = vmatprep.subr.bf16.mxu1 %v1623_v40  ;;  %v1625_v54 = vmov 0.0   ;;  %v1000_v26 = vpop.permute.xlu1 %999 }
  0xee   :  { %v826_v60 = vadd.f32 %v818_v42, %v802_v45  ;;  %v979_v58 = vld [vmem:[%s2490_s5 + $0x70] sm:$0xff]  ;;  %v980_v44 = vld [vmem:[%s2490_s5 + $0x78] sm:$0xff]  ;;  %1529 = vmatprep.mubr.msk.f32.mxu1 %vm1624_vm1, %v1625_v54 }
  0xef   :  { %v758_v48 = vrot.slane %v541_v17, %v2562_v11  ;;  %v783_v36 = vrot.slane %v541_v17, %v2540_v16  ;;  %v542_v20 = vmax.f32 %v532_v41, %v522_v33  ;;  %v807_v2 = vrot.slane %v541_v17, %v1991_v10 }
  0xf0   :  { %v850_v37 = vadd.f32 %v842_v38, %v826_v60  ;;  %v831_v35 = vrot.slane %v541_v17, %v2545_v29 }
  0xf1   :  { %v771_v12 = vmul.f32 %v2034_v21, %v758_v48  ;;  %v869_v23 = vmul.f32 %v2176_v46, %v758_v48  ;;  %v795_v22 = vmul.f32 %v2122_v15, %v783_v36  ;;  %v893_v32 = vmul.f32 %v2167_v4, %v783_v36  ;;  %v1010_v17 = vpop.permute.xlu1 %1009 }
  0xf2   :  { %v819_v61 = vmul.f32 %v2101_v55, %v807_v2  ;;  %v917_v49 = vmul.f32 %v2199_v13, %v807_v2  ;;  %v843_v53 = vmul.f32 %v2129_v57, %v831_v35  ;;  %v857_v50 = vrot.slane %v542_v20, %v2562_v11 }
  0xf3   :  { %v779_v63 = vadd.f32 %v771_v12, %v752_v51  ;;  %v877_v14 = vadd.f32 %v869_v23, %v850_v37  ;;  %v882_v15 = vrot.slane %v542_v20, %v2540_v16  ;;  %v906_v0 = vrot.slane %v542_v20, %v1991_v10 }
  0xf4   :  { %v870_v34 = vmul.f32 %v2176_v46, %v857_v50  ;;  %v941_v9 = vmul.f32 %v2201_v18, %v831_v35  ;;  %v930_v57 = vrot.slane %v542_v20, %v2545_v29  ;;  %v967_v29 = vld [vmem:[%s2490_s5 + $0x10] sm:$0xff] }
  0xf5   :  { %v803_v30 = vadd.f32 %v795_v22, %v779_v63  ;;  %v901_v21 = vadd.f32 %v893_v32, %v877_v14  ;;  %v894_v55 = vmul.f32 %v2167_v4, %v882_v15  ;;  %v918_v62 = vmul.f32 %v2199_v13, %v906_v0  ;;  %v966_v13 = vld [vmem:[%s2490_s5 + $0x8] sm:$0xff]  ;;  %v968_v4 = vld [vmem:[%s2490_s5 + $0x18] sm:$0xff]  ;;  %v1015_v45 = vpop.permute.xlu1 %1014 }
  0xf6   :  { %v942_v16 = vmul.f32 %v2201_v18, %v930_v57  ;;  %v969_v18 = vld [vmem:[%s2490_s5 + $0x20] sm:$0xff] }
  0xf7   :  { %v827_v25 = vadd.f32 %v819_v61, %v803_v30  ;;  %v925_v24 = vadd.f32 %v917_v49, %v901_v21 }
  0xf9   :  { %v851_v8 = vadd.f32 %v843_v53, %v827_v25  ;;  %v949_v43 = vadd.f32 %v941_v9, %v925_v24  ;;  %v1025_v51 = vpop.permute.xlu1 %1024 }
  0xfb   :  { %v878_v28 = vadd.f32 %v870_v34, %v851_v8  ;;  %v963_v46 = vadd.f32 %v2228_v39, %v949_v43 }
  0xfd   :  { %v902_v1 = vadd.f32 %v894_v55, %v878_v28  ;;  %v1035_v38 = vpop.permute.xlu1 %1034 }
  0xff   :  { %v926_v7 = vadd.f32 %v918_v62, %v902_v1 }
 0x101   :  { %v950_v27 = vadd.f32 %v942_v16, %v926_v7  ;;  %v1045_v30 = vpop.permute.xlu1 %1044 }
 0x103   :  { %v964_v10 = vadd.f32 %v2228_v39, %v950_v27  ;;  %v970_v39 = vld [vmem:[%s2490_s5 + $0x28] sm:$0xff] }
 0x105   :  { %v1544_v31 = vpack.c.bf16 %v964_v10, %v963_v46  ;;  %v1055_v15 = vpop.permute.xlu1 %1054 }
 0x107   :  { %1545 = vmatprep.subr.bf16.mxu0 %v1544_v31 }
 0x108   :  { %1547 = vmatpush3.bf16.msra.mxu0 %v1544_v31 }
 0x109   :  { %v1065_v43 = vpop.permute.xlu1 %1064 }
 0x10b   :  { %1474 = vmatmul.mubr.msk.f32.vlgmr.msra.gmra.mrb[0].mxu0 %vm1077_vm0, %v966_v13 }
 0x10c   :  { %1476 = vmatprep.mubr.msk.f32.mxu0 %vm1077_vm0, %v967_v29 }
 0x10d   :  { %v1075_v29 = vpop.permute.xlu1 %1074 }
 0x10f   :  { %1477 = vmatmul.mubr.msk.f32.gmra.mrb[2].mxu0 %vm1077_vm0, %v968_v4 }
 0x110   :  { %1479 = vmatprep.mubr.msk.f32.mxu0 %vm1077_vm0, %v969_v18 }
 0x113   :  { %1480 = vmatmul.mubr.msk.f32.gmra.mrb[4].mxu0 %vm1077_vm0, %v970_v39 }
 0x114   :  { %1482 = vmatprep.mubr.msk.f32.mxu0 %vm1077_vm0, %v971_v6 }
 0x117   :  { %1483 = vmatmul.mubr.msk.f32.gmra.mrb[6].mxu0 %vm1077_vm0, %v972_v3 }
 0x118   :  { %1485 = vmatprep.mubr.msk.f32.mxu0 %vm1077_vm0, %v973_v47 }
 0x11b   :  { %1486 = vmatmul.mubr.msk.f32.gmra.mrb[8].mxu0 %vm1077_vm0, %v974_v56 }
 0x11c   :  { %1488 = vmatprep.mubr.msk.f32.mxu0 %vm1077_vm0, %v975_v59  ;;  %v1271_v59 = vld [vmem:[%s2492_s7] sm:$0x7] }
 0x11f   :  { %1489 = vmatmul.mubr.msk.f32.gmra.mrb[10].mxu0 %vm1077_vm0, %v976_v5  ;;  %v1005_v42 = vpop.permute.xlu0 %1004 }
 0x120   :  { %1491 = vmatprep.mubr.msk.f32.mxu0 %vm1077_vm0, %v977_v52 }
 0x123   :  { %1492 = vmatmul.mubr.msk.f32.gmra.mrb[12].mxu0 %vm1077_vm0, %v978_v19  ;;  %v1020_v41 = vpop.permute.xlu0 %1019 }
 0x124   :  { %1494 = vmatprep.mubr.msk.f32.mxu0 %vm1077_vm0, %v979_v58 }
 0x127   :  { %1495 = vmatmul.mubr.msk.f32.gmra.mrb[14].mxu0 %vm1077_vm0, %v980_v44 }
 0x12a   :  { %v1030_v37 = vpop.permute.xlu0 %1029 }
 0x12f   :  { %v1040_v35 = vpop.permute.xlu0 %1039 }
 0x133   :  { %v1050_v0 = vpop.permute.xlu0 %1049 }
 0x138   :  { %v1060_v16 = vpop.permute.xlu0 %1059 }
 0x13c   :  { %v1070_v39 = vpop.permute.xlu0 %1069 }
 0x140   :  { %v1276_v5 = vpop.permute.xlu0 %1275 }
 0x1de   :  { %v1475_v11 = vpop.f32.mrb[0].mxu0 }
 0x1df   :  { %v1198_v48 = vadd.f32 %v1475_v11, %v1005_v42  ;;  %v1192_v36 = vpop.f32.mrb[1].mxu0 }
 0x1e0   :  { %v1193_v60 = vadd.f32 %v1192_v36, %v1000_v26 }
 0x1e2   :  { %v1478_v33 = vpop.f32.mrb[2].mxu0  ;;  %v1549_v12 = vpack.c.bf16 %v1198_v48, %v1193_v60 }
 0x1e3   :  { %v1208_v23 = vadd.f32 %v1478_v33, %v1015_v45  ;;  %v1202_v20 = vpop.f32.mrb[3].mxu0 }
 0x1e4   :  { %v1203_v63 = vadd.f32 %v1202_v20, %v1010_v17  ;;  %1550 = vmatpush3.bf16.msra.mxu1 %v1549_v12 }
 0x1e5   :  { %1551 = vmatprep.subr.bf16.mxu1 %v1623_v40 }
 0x1e6   :  { %v1552_v22 = vpack.c.bf16 %v1208_v23, %v1203_v63  ;;  %v1481_v2 = vpop.f32.mrb[4].mxu0 }
 0x1e7   :  { %v1218_v14 = vadd.f32 %v1481_v2, %v1025_v51  ;;  %v1212_v32 = vpop.f32.mrb[5].mxu0 }
 0x1e8   :  { %v1213_v61 = vadd.f32 %v1212_v32, %v1020_v41  ;;  %1553 = vmatpush3.bf16.msra.mxu1 %v1552_v22 }
 0x1e9   :  { %1554 = vmatprep.subr.bf16.mxu1 %v1623_v40 }
 0x1ea   :  { %v1555_v49 = vpack.c.bf16 %v1218_v14, %v1213_v61  ;;  %v1484_v21 = vpop.f32.mrb[6].mxu0 }
 0x1eb   :  { %v1228_v25 = vadd.f32 %v1484_v21, %v1035_v38  ;;  %v1222_v53 = vpop.f32.mrb[7].mxu0 }
 0x1ec   :  { %v1223_v50 = vadd.f32 %v1222_v53, %v1030_v37  ;;  %1556 = vmatpush3.bf16.msra.mxu1 %v1555_v49 }
 0x1ed   :  { %1557 = vmatprep.subr.bf16.mxu1 %v1623_v40 }
 0x1ee   :  { %v1558_v8 = vpack.c.bf16 %v1228_v25, %v1223_v50  ;;  %v1487_v34 = vpop.f32.mrb[8].mxu0 }
 0x1ef   :  { %v1238_v24 = vadd.f32 %v1487_v34, %v1045_v30  ;;  %v1232_v28 = vpop.f32.mrb[9].mxu0 }
 0x1f0   :  { %v1233_v55 = vadd.f32 %v1232_v28, %v1040_v35  ;;  %1559 = vmatpush3.bf16.msra.mxu1 %v1558_v8 }
 0x1f1   :  { %1560 = vmatprep.subr.bf16.mxu1 %v1623_v40 }
 0x1f2   :  { %v1561_v62 = vpack.c.bf16 %v1238_v24, %v1233_v55  ;;  %v1490_v9 = vpop.f32.mrb[10].mxu0 }
 0x1f3   :  { %v1248_v1 = vadd.f32 %v1490_v9, %v1055_v15  ;;  %v1242_v57 = vpop.f32.mrb[11].mxu0 }
 0x1f4   :  { %v1243_v7 = vadd.f32 %v1242_v57, %v1050_v0  ;;  %1562 = vmatpush3.bf16.msra.mxu1 %v1561_v62 }
 0x1f5   :  { %1563 = vmatprep.subr.bf16.mxu1 %v1623_v40 }
 0x1f6   :  { %v1564_v27 = vpack.c.bf16 %v1248_v1, %v1243_v7  ;;  %v1493_v46 = vpop.f32.mrb[12].mxu0 }
 0x1f7   :  { %v1258_v10 = vadd.f32 %v1493_v46, %v1065_v43  ;;  %v1252_v31 = vpop.f32.mrb[13].mxu0 }
 0x1f8   :  { %v1253_v13 = vadd.f32 %v1252_v31, %v1060_v16  ;;  %1565 = vmatpush3.bf16.msra.mxu1 %v1564_v27 }
 0x1f9   :  { %1566 = vmatprep.subr.bf16.mxu1 %v1623_v40 }
 0x1fa   :  { %v1567_v4 = vpack.c.bf16 %v1258_v10, %v1253_v13  ;;  %v1496_v18 = vpop.f32.mrb[14].mxu0 }
 0x1fb   :  { %v1268_v6 = vadd.f32 %v1496_v18, %v1075_v29  ;;  %v1262_v3 = vpop.f32.mrb[15].mxu0 }
 0x1fc   :  { %v1263_v47 = vadd.f32 %v1262_v3, %v1070_v39  ;;  %1568 = vmatpush3.bf16.msra.mxu1 %v1567_v4 }
 0x1fd   :  { %1569 = vmatprep.subr.bf16.mxu1 %v1623_v40 }
 0x1fe   :  { %v1570_v56 = vpack.c.bf16 %v1268_v6, %v1263_v47 }
 0x200   :  { %1571 = vmatpush3.bf16.msra.mxu1 %v1570_v56 }
 0x203   :  { %1530 = vmatmul.mubr.f32.vlgmr.msra.gmra.mrb[0].mxu1 %v1271_v59 }
 0x2d6   :  { %v1344_v52 = vpop.f32.mrb[0].mxu1 }
 0x2d7   :  { %v1345_v19 = vadd.f32 %v1344_v52, %v1276_v5  ;;  %v1531_v58 = vpop.f32.mrb[1].mxu1 }
 0x2d9   :  { %1349 = vst.msk [vmem:[#allocation2] sm:$0x7] %vm1348_vm2, %v1345_v19 }
 0x2da   :  { %1606 = shalt.err (!%p1603_p4)
}
 0x2db   :  { %s1607_s7 = scalar_lea.hbm %s2494_s9, 64 }
 0x2dc   :  { %p1608_p5 = scmp.ne.s32.totalorder %s2494_s9, %s1607_s7  ;;  %p1611_p6 = scmp.lt.u32.totalorder %s1607_s7, %s2494_s9 }
 0x2de   :  { %p1613_p7 = pnand %p1611_p6, %p1608_p5 }
 0x2e0   :  { %1616 = shalt.err (!%p1613_p7)
}
 0x2e1   :  { %1359 = dma.vmem_to_hbm [thread:$0]  %s1357_s23, 64, %s2494_s9, [#allocation3]  }
 0x2e2   :  { %1617 = dma.done.wait [#allocation3], 64  }
 0x2e3   :  { %1618 = vsyncadd [#allocation3], 4294967232 }
 0x2e4   :  { %1363 = vsyncpa [#allocation3], 1 }

</bundles_post_ra>
